<compile_context>
chip_gen: v6e
topology: v6e:2x2x1
jax: 0.10.0
libtpu: 0.0.40
codegen_flags: <defaults>
</compile_context>

<pallas_src>
import math

import numpy as np
import jax
import jax.numpy as jnp
from jax import lax
from jax.experimental import pallas as pl
from jax.experimental.pallas import tpu as pltpu


def _round_up(x: int, m: int) -> int:
    return ((x + m - 1) // m) * m


def _round_down(x: int, m: int) -> int:
    return (x // m) * m


def _gaussian_kernel_1d(ksize: int, sigma: float) -> np.ndarray:
    """Deterministic stand-in for cv2.getGaussianKernel(ksize, sigma)."""
    xs = np.arange(ksize, dtype=np.float64) - (ksize - 1) / 2.0
    w = np.exp(-(xs ** 2) / (2.0 * sigma ** 2))
    return (w / w.sum()).astype(np.float32)


def _make_blur_kernel(taps, H: int, W: int, tile_h: int, hu: int, in_is_u8: bool):
    """Build the kernel body with the Gaussian taps baked in as constants."""
    K = len(taps)
    p = K // 2
    taps = [float(t) for t in taps]                       # compile-time scalars
    symmetric = all(abs(taps[k] - taps[K - 1 - k]) < 1e-12 for k in range(K))
    off = hu - p                                          # first needed halo row
    rows = tile_h + 2 * hu                                # combined column height

    def blur_kernel(top_ref, main_ref, bot_ref, out_ref):
        # top_ref : (hu, W)     rows just above the main block (clamped at top)
        # main_ref: (tile_h, W) rows [i*tile_h, (i+1)*tile_h) of the raw image
        # bot_ref : (hu, W)     rows just below the main block (clamped at bottom)
        # out_ref : (tile_h, W) uint8 blurred rows for this tile
        i = pl.program_id(0)

        # Concatenate at the narrow dtype (1 B/px for uint8), widen ONCE.
        col_raw = jnp.concatenate(
            [top_ref[...], main_ref[...], bot_ref[...]], axis=0)

        # Row-validity mask implements the conv zero-padding at the image
        # top/bottom and also zeroes garbage rows from clamped / partial blocks.
        row_ids = i * tile_h - hu + lax.broadcasted_iota(jnp.int32, (rows, 1), 0)
        valid = jnp.logical_and(row_ids >= 0, row_ids < H)
        if in_is_u8:
            col = jnp.where(valid, col_raw.astype(jnp.int32), 0).astype(jnp.float32)
        else:
            col = jnp.where(valid, col_raw.astype(jnp.float32), 0.0)

        # Vertical pass (symmetric-tap pairing when the kernel is symmetric).
        def vwin(k):
            return col[off + k: off + k + tile_h, :]

        if symmetric:
            acc_v = taps[p] * vwin(p)
            for k in range(p):
                acc_v = acc_v + taps[k] * (vwin(k) + vwin(K - 1 - k))
        else:
            acc_v = taps[0] * vwin(0)
            for k in range(1, K):
                acc_v = acc_v + taps[k] * vwin(k)

        # Horizontal pass on the in-register vertical result; the conv
        # zero-padding along W is a small in-VMEM pad (no HBM traffic).
        acc_vp = jnp.pad(acc_v, ((0, 0), (p, p)))

        def hwin(k):
            return acc_vp[:, k: k + W]

        if symmetric:
            acc_h = taps[p] * hwin(p)
            for k in range(p):
                acc_h = acc_h + taps[k] * (hwin(k) + hwin(K - 1 - k))
        else:
            acc_h = taps[0] * hwin(0)
            for k in range(1, K):
                acc_h = acc_h + taps[k] * hwin(k)

        # f32 -> i32 truncates toward zero (matches torch .to(torch.uint8)
        # for in-range values), then narrow to u8 for the 1 B/px writeback.
        out_ref[...] = acc_h.astype(jnp.int32).astype(jnp.uint8)

    return blur_kernel


def _pick_vmem_limit_bytes() -> int:
    """64 MiB scoped VMEM on 128-MiB chips (v5e/v6e), 32 MiB on v7x/unknown."""
    try:
        cap = int(pltpu.get_tpu_info().vmem_capacity_bytes)
    except Exception:
        cap = 0
    if cap >= 128 * 1024 * 1024:
        return 64 * 1024 * 1024
    return 32 * 1024 * 1024


def gaussian_blur(img, gauss_1d, *, tile_h=None):
    """img: (H, W) numeric array; gauss_1d: (K,) taps. Returns uint8 (H, W)."""
    img = jnp.asarray(img)
    assert img.ndim == 2, "expected a single-channel (H, W) image"
    taps = np.asarray(gauss_1d, dtype=np.float32).reshape(-1)
    K = int(taps.shape[0])
    assert K % 2 == 1, "Gaussian kernel length must be odd"
    p = K // 2
    H, W = int(img.shape[0]), int(img.shape[1])

    is_u8 = (img.dtype == jnp.uint8)
    if not is_u8:
        # Non-uint8 inputs cross HBM as f32 (matches the torch float path).
        img = img.astype(jnp.float32)

    # Halo height: one native sublane tile of the input dtype (uint8 -> 32,
    # f32 -> 8), rounded up to cover the K-1 extra vertical taps.
    unit = 32 if is_u8 else 8
    hu = _round_up(max(p, 1), unit)
    assert hu >= p

    vmem_limit = _pick_vmem_limit_bytes()

    # Row-tile height: fit the f32 temporaries + narrow double-buffered I/O in
    # ~half the VMEM limit, prefer >=4 grid steps (v7x 2 TCs + pipelining),
    # and never drop below 128 rows on large images (halo re-read <= 50%).
    if tile_h is None:
        w_lane = _round_up(W + 2 * p, 128)
        budget = vmem_limit // 2
        cap = max(hu, _round_down(budget // (w_lane * 20), 32))
        target = max(128, min(512, _round_down(max(H // 4, 1), 32)))
        tile_h = min(cap, target, _round_up(H, hu))
    tile_mult = (hu * 32) // math.gcd(hu, 32)            # legal for u8 output too
    tile_h = _round_up(max(int(tile_h), tile_mult), tile_mult)

    num_tiles = pl.cdiv(H, tile_h)
    s = tile_h // hu                                      # halo blocks per main block
    max_row_blk = pl.cdiv(H, hu) - 1                      # last (possibly partial) halo block

    kernel_fn = _make_blur_kernel(taps, H, W, tile_h, hu, is_u8)

    out = pl.pallas_call(
        kernel_fn,
        out_shape=jax.ShapeDtypeStruct((H, W), jnp.uint8),
        grid=(num_tiles,),
        in_specs=[
            # hu-row halo just above the main block; clamped at the top edge
            # (the out-of-range rows are zeroed in-kernel by the row mask).
            pl.BlockSpec((hu, W), lambda i, s=s: (jnp.maximum(i * s - 1, 0), 0)),
            # Main row block of the raw image.
            pl.BlockSpec((tile_h, W), lambda i: (i, 0)),
            # hu-row halo just below the main block; clamped at the bottom edge.
            pl.BlockSpec((hu, W),
                         lambda i, s=s, m=max_row_blk: (jnp.minimum((i + 1) * s, m), 0)),
        ],
        out_specs=pl.BlockSpec((tile_h, W), lambda i: (i, 0)),
        compiler_params=pltpu.CompilerParams(
            dimension_semantics=("parallel",),            # shard row tiles over TCs
            vmem_limit_bytes=vmem_limit,
        ),
    )(img, img, img)

    return out


def _reference_blur(img, gauss_1d):
    """Pure-numpy reference matching F.conv2d(vkernel) -> F.conv2d(hkernel)."""
    img = np.asarray(img, dtype=np.float32)
    w = np.asarray(gauss_1d, dtype=np.float32)
    K = w.shape[0]
    p = K // 2
    H, W = img.shape
    padded_v = np.pad(img, ((p, p), (0, 0)))
    tmp = np.zeros((H, W), np.float32)
    for k in range(K):
        tmp += w[k] * padded_v[k:k + H, :]
    padded_h = np.pad(tmp, ((0, 0), (p, p)))
    out = np.zeros((H, W), np.float32)
    for k in range(K):
        out += w[k] * padded_h[:, k:k + W]
    return out.astype(np.uint8)


if __name__ == "__main__":
    H, W = 512, 200          # W deliberately not a multiple of 128
    K, SIGMA = 5, 1.2

    gauss = _gaussian_kernel_1d(K, SIGMA)

    key = jax.random.PRNGKey(0)
    img = jax.random.randint(key, (H, W), 0, 256, dtype=jnp.int32).astype(jnp.uint8)

    out = gaussian_blur(img, gauss)           # auto tile_h -> 4 parallel row tiles
    out = jax.block_until_ready(out)

    ref = _reference_blur(np.asarray(img), gauss)
    out_np = np.asarray(out)
    assert out_np.shape == (H, W) and out_np.dtype == np.uint8
    # Allow off-by-one at truncation boundaries from differing f32 accumulation order.
    assert np.max(np.abs(out_np.astype(np.int32) - ref.astype(np.int32))) <= 1

    print("KERNEL_OK")
</pallas_src>

<mosaic_0001>
module attributes {stable_mosaic.version = 11 : i64} {
  func.func @blur_kernel(%arg0: i32, %arg1: memref<32x200xi8, #tpu.memory_space<vmem>>, %arg2: memref<128x200xi8, #tpu.memory_space<vmem>>, %arg3: memref<32x200xi8, #tpu.memory_space<vmem>>, %arg4: memref<128x200xi8, #tpu.memory_space<vmem>>) attributes {dimension_semantics = [#tpu.dimension_semantics<parallel>], iteration_bounds = array<i64: 4>, scalar_prefetch = 0 : i64, scratch_operands = 0 : i64, tpu.core_type = #tpu.core_type<tc>, window_params = [{transform_indices = @transform_0, window_bounds = array<i64: 32, 200>}, {transform_indices = @transform_1, window_bounds = array<i64: 128, 200>}, {transform_indices = @transform_2, window_bounds = array<i64: 32, 200>}, {transform_indices = @transform_3, window_bounds = array<i64: 128, 200>}]} {
    %c0 = arith.constant 0 : index
    %c0_0 = arith.constant 0 : index
    %0 = vector.load %arg1[%c0, %c0_0] : memref<32x200xi8, #tpu.memory_space<vmem>>, vector<32x200xi8>
    %c0_1 = arith.constant 0 : index
    %c0_2 = arith.constant 0 : index
    %1 = vector.load %arg2[%c0_1, %c0_2] : memref<128x200xi8, #tpu.memory_space<vmem>>, vector<128x200xi8>
    %c0_3 = arith.constant 0 : index
    %c0_4 = arith.constant 0 : index
    %2 = vector.load %arg3[%c0_3, %c0_4] : memref<32x200xi8, #tpu.memory_space<vmem>>, vector<32x200xi8>
    %3 = tpu.concatenate %0, %1, %2 in 0 : vector<32x200xi8>, vector<128x200xi8>, vector<32x200xi8> -> vector<192x200xi8>
    %c128_i32 = arith.constant 128 : i32
    %4 = arith.muli %arg0, %c128_i32 : i32
    %c32_i32 = arith.constant 32 : i32
    %5 = arith.subi %4, %c32_i32 : i32
    %6 = tpu.iota {dimensions = array<i32: 0>} : vector<192x1xi32>
    %7 = vector.broadcast %5 : i32 to vector<192x1xi32>
    %8 = arith.addi %7, %6 : vector<192x1xi32>
    %c0_i32 = arith.constant 0 : i32
    %9 = vector.broadcast %c0_i32 : i32 to vector<192x1xi32>
    %10 = arith.cmpi sge, %8, %9 : vector<192x1xi32>
    %c512_i32 = arith.constant 512 : i32
    %11 = vector.broadcast %c512_i32 : i32 to vector<192x1xi32>
    %12 = arith.cmpi slt, %8, %11 : vector<192x1xi32>
    %13 = arith.andi %10, %12 : vector<192x1xi1>
    %14 = arith.extui %3 : vector<192x200xi8> to vector<192x200xi32>
    %c0_i32_5 = arith.constant 0 : i32
    %15 = vector.shape_cast %13 : vector<192x1xi1> to vector<192x1xi1>
    %16 = vector.broadcast %15 : vector<192x1xi1> to vector<192x200xi1>
    %17 = vector.broadcast %c0_i32_5 : i32 to vector<192x200xi32>
    %18 = arith.select %16, %14, %17 : vector<192x200xi1>, vector<192x200xi32>
    %19 = arith.sitofp %18 : vector<192x200xi32> to vector<192x200xf32>
    %20 = vector.extract_strided_slice %19 {offsets = [32, 0], sizes = [128, 200], strides = [1, 1]} : vector<192x200xf32> to vector<128x200xf32>
    %cst = arith.constant 0.343406469 : f32
    %21 = vector.broadcast %cst : f32 to vector<128x200xf32>
    %22 = arith.mulf %21, %20 : vector<128x200xf32>
    %23 = vector.extract_strided_slice %19 {offsets = [30, 0], sizes = [128, 200], strides = [1, 1]} : vector<192x200xf32> to vector<128x200xf32>
    %24 = vector.extract_strided_slice %19 {offsets = [34, 0], sizes = [128, 200], strides = [1, 1]} : vector<192x200xf32> to vector<128x200xf32>
    %25 = arith.addf %23, %24 : vector<128x200xf32>
    %cst_6 = arith.constant 0.0856291651 : f32
    %26 = vector.broadcast %cst_6 : f32 to vector<128x200xf32>
    %27 = arith.mulf %26, %25 : vector<128x200xf32>
    %28 = arith.addf %22, %27 : vector<128x200xf32>
    %29 = vector.extract_strided_slice %19 {offsets = [31, 0], sizes = [128, 200], strides = [1, 1]} : vector<192x200xf32> to vector<128x200xf32>
    %30 = vector.extract_strided_slice %19 {offsets = [33, 0], sizes = [128, 200], strides = [1, 1]} : vector<192x200xf32> to vector<128x200xf32>
    %31 = arith.addf %29, %30 : vector<128x200xf32>
    %cst_7 = arith.constant 0.242667601 : f32
    %32 = vector.broadcast %cst_7 : f32 to vector<128x200xf32>
    %33 = arith.mulf %32, %31 : vector<128x200xf32>
    %34 = arith.addf %28, %33 : vector<128x200xf32>
    %c0_i32_8 = arith.constant 0 : i32
    %35 = arith.sitofp %c0_i32_8 : i32 to f32
    %36 = vector.broadcast %35 : f32 to vector<128x2xf32>
    %37 = tpu.concatenate %36, %34 in 1 : vector<128x2xf32>, vector<128x200xf32> -> vector<128x202xf32>
    %38 = vector.broadcast %35 : f32 to vector<128x2xf32>
    %39 = tpu.concatenate %37, %38 in 1 : vector<128x202xf32>, vector<128x2xf32> -> vector<128x204xf32>
    %40 = vector.extract_strided_slice %39 {offsets = [0, 2], sizes = [128, 200], strides = [1, 1]} : vector<128x204xf32> to vector<128x200xf32>
    %cst_9 = arith.constant 0.343406469 : f32
    %41 = vector.broadcast %cst_9 : f32 to vector<128x200xf32>
    %42 = arith.mulf %41, %40 : vector<128x200xf32>
    %43 = vector.extract_strided_slice %39 {offsets = [0, 0], sizes = [128, 200], strides = [1, 1]} : vector<128x204xf32> to vector<128x200xf32>
    %44 = vector.extract_strided_slice %39 {offsets = [0, 4], sizes = [128, 200], strides = [1, 1]} : vector<128x204xf32> to vector<128x200xf32>
    %45 = arith.addf %43, %44 : vector<128x200xf32>
    %cst_10 = arith.constant 0.0856291651 : f32
    %46 = vector.broadcast %cst_10 : f32 to vector<128x200xf32>
    %47 = arith.mulf %46, %45 : vector<128x200xf32>
    %48 = arith.addf %42, %47 : vector<128x200xf32>
    %49 = vector.extract_strided_slice %39 {offsets = [0, 1], sizes = [128, 200], strides = [1, 1]} : vector<128x204xf32> to vector<128x200xf32>
    %50 = vector.extract_strided_slice %39 {offsets = [0, 3], sizes = [128, 200], strides = [1, 1]} : vector<128x204xf32> to vector<128x200xf32>
    %51 = arith.addf %49, %50 : vector<128x200xf32>
    %cst_11 = arith.constant 0.242667601 : f32
    %52 = vector.broadcast %cst_11 : f32 to vector<128x200xf32>
    %53 = arith.mulf %52, %51 : vector<128x200xf32>
    %54 = arith.addf %48, %53 : vector<128x200xf32>
    %55 = arith.fptosi %54 : vector<128x200xf32> to vector<128x200xi32>
    %56 = arith.trunci %55 : vector<128x200xi32> to vector<128x200xi8>
    %c0_12 = arith.constant 0 : index
    %c0_13 = arith.constant 0 : index
    %57 = vector.load %arg4[%c0_12, %c0_13] : memref<128x200xi8, #tpu.memory_space<vmem>>, vector<128x200xi8>
    tpu.vector_store %arg4[%c0_12, %c0_13], %56 {strides = array<i32>} : memref<128x200xi8, #tpu.memory_space<vmem>>, vector<128x200xi8>,
    return
  }
  func.func @transform_0(%arg0: i32) -> (i32, i32) {
    %c4_i32 = arith.constant 4 : i32
    %0 = arith.muli %arg0, %c4_i32 : i32
    %c1_i32 = arith.constant 1 : i32
    %1 = arith.subi %0, %c1_i32 : i32
    %c0_i32 = arith.constant 0 : i32
    %2 = arith.maxsi %1, %c0_i32 : i32
    %c0_i32_0 = arith.constant 0 : i32
    %c0_i32_1 = arith.constant 0 : i32
    return %2, %c0_i32_0 : i32, i32
  }
  func.func @transform_1(%arg0: i32) -> (i32, i32) {
    %c0_i32 = arith.constant 0 : i32
    %c0_i32_0 = arith.constant 0 : i32
    return %arg0, %c0_i32 : i32, i32
  }
  func.func @transform_2(%arg0: i32) -> (i32, i32) {
    %c1_i32 = arith.constant 1 : i32
    %0 = arith.addi %arg0, %c1_i32 : i32
    %c4_i32 = arith.constant 4 : i32
    %1 = arith.muli %0, %c4_i32 : i32
    %c15_i32 = arith.constant 15 : i32
    %2 = arith.minsi %1, %c15_i32 : i32
    %c0_i32 = arith.constant 0 : i32
    %c0_i32_0 = arith.constant 0 : i32
    return %2, %c0_i32 : i32, i32
  }
  func.func @transform_3(%arg0: i32) -> (i32, i32) {
    %c0_i32 = arith.constant 0 : i32
    %c0_i32_0 = arith.constant 0 : i32
    return %arg0, %c0_i32 : i32, i32
  }
}

</mosaic_0001>

<bundles_post_ra>
// kernel: tpu_custom_call.1
= control target key start
LH: loop header
LB: loop body
LE: loop exit
PB: predicated region body
PF: predicated region fallthrough
CT: control target
= control target key end

     0   :  { %s2704_s12 = smov 0   ;;  %s4237_s0 = inlined_call_operand.vmem [shape: u8[512,200], index: 0, kind: input, shape index: {}]   ;;  %s4238_s1 = inlined_call_operand.vmem [shape: u8[512,200], index: 1, kind: input, shape index: {}]   ;;  %s4239_s2 = inlined_call_operand.vmem [shape: u8[512,200], index: 2, kind: input, shape index: {}]   ;;  %s4240_s3 = inlined_call_operand.vmem [shape: u8[512,200], index: 3, kind: output, shape index: {}]  }
   0x1 LB: > { %s2710_s13 = sadd.s32 4294967295, %s2678_s12   ;;  %p2484_p0 = scmp.ge.s32.totalorder %s2678_s12, 1  ;;  %s2678_s12 = sphi %s2704_s12, %s13_s12  }
   0x2   : > { %p191_p1 = scmp.lt.s32.totalorder %s2678_s12, 5 }
   0x4   : > { %p192_p2 = pnand %p2484_p0, %p191_p1 }
   0x6   : > { %195 = sbr.rel (%p192_p2) target bundleno = 749 (0x2ed), region = 32 }
   0xb   : > { %s2715_s14 = sshll.u32 %s2710_s13, 2  ;;  %s2506_s15 = sshll.u32 %s2710_s13, 7  ;;  %v289_v0 = vlaneseq  ;;  %vm628_vm4 = vcmask 1043456   ;;  %vm962_vm7 = vcmask 1045504   ;;  %vm831_vm12 = vcmask 1041408  }
   0xc   : > { %p249_p3 = scmp.lt.s32.totalorder %s2715_s14, 15  ;;  %s2507_s16 = sadd.s32 4294967264, %s2506_s15  ;;  %vm1165_vm14 = vcmask 1040384  }
   0xd   : > { %v2719_v1 = vshrl.u32 %v289_v0, 7  ;;  %s2722_s17 = sadd.s32 4294967295, %s2715_s14  ;;  %v2725_v2 = vstv %s2507_s16  ;;  %s2680_s28 = smov 2  }
   0xe   : > { %s250_s18 = scalar_select %p249_p3, %s2715_s14, 15 }
   0xf   : > { %v292_v3 = vadd.s32 32, %v2719_v1  ;;  %v293_v4 = vadd.s32 40, %v2719_v1  ;;  %v294_v5 = vadd.s32 48, %v2719_v1  ;;  %p237_p4 = scmp.gt.s32.totalorder %s2722_s17, 0  ;;  %v291_v6 = vadd.s32 24, %v2719_v1  ;;  %p2487_p5 = scmp.lt.s32.totalorder %s2722_s17, 15 }
  0x10   : > { %s2591_s19 = sshll.u32 %s250_s18, 4  ;;  %v295_v7 = vadd.s32 56, %v2719_v1  ;;  %v296_v8 = vadd.s32 64, %v2719_v1  ;;  %v297_v9 = vadd.s32 72, %v2719_v1  ;;  %v2745_v13 = vadd.s32 80, %v2719_v1  ;;  %s2593_s29 = sadd.s32 4, %s2715_s14 }
  0x11   : > { %s2739_s22 = scalar_lea.vmem %s4238_s1, %s2591_s19  ;;  %v311_v10 = vadd.s32 %v2725_v2, %v292_v3  ;;  %v312_v11 = vadd.s32 %v2725_v2, %v293_v4  ;;  %v313_v12 = vadd.s32 %v2725_v2, %v294_v5  ;;  %v2755_v16 = vadd.s32 %v2725_v2, %v291_v6  ;;  %p3440_p6 = scmp.lt.s32.totalorder %s2593_s29, 15 }
  0x12   : > { %v277_v14 = vld [vmem:[%s2739_s22] sm:$0xff]  ;;  %v2749_v15 = vld [vmem:[%s2739_s22 + $0x8] sm:$0xff]  ;;  %s238_s23 = scalar_select %p237_p4, %s2722_s17, 0  ;;  %v2758_v17 = vadd.s32 %v2725_v2, %v295_v7  ;;  %v2761_v18 = vadd.s32 %v2725_v2, %v296_v8  ;;  %v2764_v19 = vadd.s32 %v2725_v2, %v297_v9 }
  0x13   : > { %vm329_vm0 = vcmp.ge.s32.totalorder %v311_v10, 0  ;;  %vm330_vm1 = vcmp.ge.s32.totalorder %v312_v11, 0  ;;  %vm331_vm2 = vcmp.ge.s32.totalorder %v313_v12, 0  ;;  %vm347_vm3 = vcmp.lt.s32.totalorder %v311_v10, 512  ;;  %s4315_s29 = smov (!%p3440_p6, %s2593_s29), 15  ;;  %s2681_s8 = smov 124  }
  0x14   : > { %vm348_vm5 = vcmp.lt.s32.totalorder %v312_v11, 512  ;;  %vm349_vm6 = vcmp.lt.s32.totalorder %v313_v12, 512  ;;  %v384_v20 = vunpack.c.0.s8 %v277_v14  ;;  %v385_v21 = vunpack.c.0.s8 %v2749_v15  ;;  %s4313_s23 = smov (!%p2487_p5, %s238_s23), 15  ;;  %vm2772_vm8 = vmand %vm329_vm0, %vm347_vm3  ;;  %s4317_s29 = smov (!%p3440_p6, %s4315_s29), 15 }
  0x15   : > { %v386_v22 = vunpack.c.1.s8 %v277_v14  ;;  %v387_v23 = vunpack.c.1.s8 %v2749_v15  ;;  %v388_v24 = vunpack.c.2.s8 %v277_v14  ;;  %v389_v25 = vunpack.c.2.s8 %v2749_v15  ;;  %s2590_s24 = sshll.u32 %s4313_s23, 4  ;;  %vm2779_vm9 = vmand %vm330_vm1, %vm348_vm5  ;;  %s2594_s4 = sshll.u32 %s4317_s29, 4 }
  0x16   : > { %v390_v27 = vunpack.c.3.s8 %v277_v14  ;;  %v391_v28 = vunpack.c.3.s8 %v2749_v15  ;;  %v420_v29 = vand.u32 255, %v384_v20  ;;  %v421_v30 = vand.u32 255, %v385_v21  ;;  %s243_s27 = scalar_lea.vmem %s4237_s0, %s2590_s24  ;;  %vm2788_vm10 = vmand %vm331_vm2, %vm349_vm6  ;;  %s263_s7 = scalar_lea.vmem %s4239_s2, %s2594_s4 }
  0x17   : > { %v422_v32 = vand.u32 255, %v386_v22  ;;  %v423_v33 = vand.u32 255, %v387_v23  ;;  %v424_v34 = vand.u32 255, %v388_v24  ;;  %v425_v35 = vand.u32 255, %v389_v25  ;;  %v275_v47 = vld [vmem:[%s243_s27] sm:$0xff]  ;;  %v276_v52 = vld [vmem:[%s243_s27 + $0x8] sm:$0xff] }
  0x18   : > { %v2792_v37 = vand.u32 255, %v390_v27  ;;  %v2512_v38 = vcvt.s32.f32 %v420_v29  ;;  %v2514_v39 = vcvt.s32.f32 %v421_v30  ;;  %vm328_vm11 = vcmp.ge.s32.totalorder %v2755_v16, 0  ;;  %s2682_s9 = smov 126   ;;  %s2683_s10 = smov 1  }
  0x19   : > { %v2516_v40 = vcvt.s32.f32 %v422_v32  ;;  %v2518_v41 = vcvt.s32.f32 %v423_v33  ;;  %v2520_v42 = vcvt.s32.f32 %v424_v34  ;;  %v2522_v43 = vcvt.s32.f32 %v425_v35  ;;  %s2503_s11 = sshll.u32 %s2710_s13, 4 }
  0x1a   : > { %v2513_v44 = vsel %vm2772_vm8, %v2512_v38, 0.0  ;;  %v2799_v45 = vsel %vm2772_vm8, %v2514_v39, 0.0  ;;  %v2524_v46 = vcvt.s32.f32 %v2792_v37  ;;  %vm346_vm13 = vcmp.lt.s32.totalorder %v2755_v16, 512  ;;  %p269_p7 = scmp.lt.s32.totalorder %s2503_s11, 63 }
  0x1b   : > { %v2517_v48 = vsel %vm2779_vm9, %v2516_v40, 0.0  ;;  %v2807_v49 = vsel %vm2779_vm9, %v2518_v41, 0.0  ;;  %v2811_v50 = vsel %vm2788_vm10, %v2520_v42, 0.0  ;;  %v2815_v51 = vsel %vm2788_vm10, %v2522_v43, 0.0  ;;  %vm364_vm15 = vmand %vm328_vm11, %vm346_vm13 }
  0x1c   : > { %v564_v53 = vmul.f32 0.34340647, %v2517_v48  ;;  %v629_v54 = vrot.slane %v2513_v44, 4  ;;  %v631_v55 = vrot.slane %v2517_v48, 4  ;;  %v635_v56 = vrot.slane %v2811_v50, 4  ;;  %s4319_s11 = smov (!%p269_p7, %s2503_s11), 63 }
  0x1d   : > { %v963_v57 = vrot.slane %v2513_v44, 2  ;;  %v965_v58 = vrot.slane %v2517_v48, 2  ;;  %v969_v59 = vrot.slane %v2811_v50, 2  ;;  %v382_v60 = vunpack.c.3.s8 %v275_v47  ;;  %s2595_s14 = sshll.u32 %s4319_s11, 2 }
  0x1e   : > { %v632_v61 = vsel %vm628_vm4, %v629_v54, %v631_v55  ;;  %v636_v62 = vsel %vm628_vm4, %v631_v55, %v635_v56  ;;  %v383_v63 = vunpack.c.3.s8 %v276_v52  ;;  %v562_v0 = vmul.f32 0.34340647, %v2513_v44  ;;  %s4163_s17 = scalar_lea.vmem %s4240_s3, %s2595_s14 }
  0x1f   : > { %v731_v3 = vadd.f32 %v2513_v44, %v632_v61  ;;  %v733_v4 = vadd.f32 %v2517_v48, %v636_v62  ;;  %v966_v5 = vsel %vm962_vm7, %v963_v57, %v965_v58  ;;  %v970_v6 = vsel %vm962_vm7, %v965_v58, %v969_v59 }
  0x20   : > { %v1065_v7 = vadd.f32 %v2513_v44, %v966_v5  ;;  %v1067_v8 = vadd.f32 %v2517_v48, %v970_v6  ;;  %v418_v9 = vand.u32 255, %v382_v60  ;;  %v419_v10 = vand.u32 255, %v383_v63 }
  0x21   : > { %v765_v11 = vmul.f32 0.085629165, %v731_v3  ;;  %v2827_v12 = vmul.f32 0.085629165, %v733_v4  ;;  %v630_v14 = vrot.slane %v2799_v45, 4  ;;  %v633_v20 = vrot.slane %v2807_v49, 4 }
  0x22   : > { %v1099_v21 = vmul.f32 0.2426676, %v1065_v7  ;;  %v2835_v22 = vmul.f32 0.2426676, %v1067_v8  ;;  %v2508_v23 = vcvt.s32.f32 %v418_v9  ;;  %v2510_v24 = vcvt.s32.f32 %v419_v10 }
  0x23   : > { %v833_v25 = vrot.slane %v765_v11, 6  ;;  %v838_v26 = vrot.slane %v2827_v12, 6  ;;  %v565_v27 = vmul.f32 0.34340647, %v2807_v49  ;;  %v634_v29 = vsel %vm628_vm4, %v630_v14, %v633_v20 }
  0x24   : > { %v1167_v30 = vrot.slane %v1099_v21, 7  ;;  %v1172_v16 = vrot.slane %v2835_v22, 7  ;;  %v2509_v31 = vsel %vm364_vm15, %v2508_v23, 0.0  ;;  %v2511_v32 = vsel %vm364_vm15, %v2510_v24, 0.0 }
  0x25   : > { %v839_v33 = vsel %vm831_vm12, %v833_v25, %v838_v26  ;;  %v729_v34 = vadd.f32 %v2509_v31, %v629_v54  ;;  %v730_v35 = vadd.f32 %v2511_v32, %v630_v14  ;;  %v1063_v36 = vadd.f32 %v2509_v31, %v963_v57 }
  0x26   : > { %v932_v38 = vadd.f32 %v839_v33, %v564_v53  ;;  %v1173_v39 = vsel %vm1165_vm14, %v1167_v30, %v1172_v16  ;;  %v637_v40 = vrot.slane %v2815_v51, 4  ;;  %v732_v41 = vadd.f32 %v2799_v45, %v634_v29 }
  0x27   : > { %v763_v42 = vmul.f32 0.085629165, %v729_v34  ;;  %v1097_v43 = vmul.f32 0.2426676, %v1063_v36  ;;  %v964_v44 = vrot.slane %v2799_v45, 2  ;;  %v967_v47 = vrot.slane %v2807_v49, 2 }
  0x28   : > { %v1266_v48 = vadd.f32 %v1173_v39, %v932_v38  ;;  %v638_v52 = vsel %vm628_vm4, %v633_v20, %v637_v40  ;;  %v766_v53 = vmul.f32 0.085629165, %v732_v41  ;;  %v971_v54 = vrot.slane %v2815_v51, 2  ;;  %v2909_v41 = vld [vmem:[%s2739_s22 + $0x18] sm:$0xff] }
  0x29   : > { %v832_v55 = vrot.slane %v763_v42, 6  ;;  %v1166_v57 = vrot.slane %v1097_v43, 7  ;;  %v734_v58 = vadd.f32 %v2807_v49, %v638_v52  ;;  %v968_v60 = vsel %vm962_vm7, %v964_v44, %v967_v47 }
  0x2a   : > { %1332 = vrot.lane.b32.xlu1 %v1266_v48, %s2680_s28  ;;  %v836_v61 = vrot.slane %v766_v53, 6  ;;  %v972_v62 = vsel %vm962_vm7, %v967_v47, %v971_v54  ;;  %v1066_v63 = vadd.f32 %v2799_v45, %v968_v60  ;;  %v563_v3 = vmul.f32 0.34340647, %v2799_v45 }
  0x2b   : > { %v834_v4 = vsel %vm831_vm12, %v832_v55, %v833_v25  ;;  %v1168_v5 = vsel %vm1165_vm14, %v1166_v57, %v1167_v30  ;;  %v2865_v6 = vmul.f32 0.085629165, %v734_v58  ;;  %v1068_v7 = vadd.f32 %v2807_v49, %v972_v62 }
  0x2c   : > { %v930_v8 = vadd.f32 %v834_v4, %v562_v0  ;;  %v1100_v9 = vmul.f32 0.2426676, %v1066_v63  ;;  %v764_v10 = vmul.f32 0.085629165, %v730_v35  ;;  %v1064_v11 = vadd.f32 %v2511_v32, %v964_v44 }
  0x2d   : > { %v840_v14 = vrot.slane %v2865_v6, 6  ;;  %v2869_v20 = vmul.f32 0.2426676, %v1068_v7  ;;  %vm332_vm0 = vcmp.ge.s32.totalorder %v2758_v17, 0  ;;  %vm350_vm1 = vcmp.lt.s32.totalorder %v2758_v17, 512 }
  0x2e   : > { %v1264_v45 = vadd.f32 %v1168_v5, %v930_v8  ;;  %v1170_v21 = vrot.slane %v1100_v9, 7  ;;  %v835_v23 = vrot.slane %v764_v10, 6  ;;  %v1098_v24 = vmul.f32 0.2426676, %v1064_v11  ;;  %vm2873_vm2 = vmand %vm332_vm0, %vm350_vm1 }
  0x2f   : > { %v841_v49 = vsel %vm831_vm12, %v836_v61, %v840_v14  ;;  %v1174_v0 = vrot.slane %v2869_v20, 7  ;;  %v2885_v17 = vsel %vm2873_vm2, %v2524_v46, 0.0  ;;  %v2889_v29 = vadd.s32 %v2725_v2, %v2745_v13  ;;  %v2901_v13 = vld [vmem:[%s2739_s22 + $0x10] sm:$0xff] }
  0x30   : > { %1328 = vrot.lane.b32.xlu0 %v1264_v45, %s2680_s28  ;;  %v933_v30 = vadd.f32 %v841_v49, %v565_v27  ;;  %v837_v31 = vsel %vm831_vm12, %v835_v23, %v836_v61  ;;  %v1169_v32 = vrot.slane %v1098_v24, 7  ;;  %v639_v33 = vrot.slane %v2885_v17, 4 }
  0x31   : > { %v1175_v37 = vsel %vm1165_vm14, %v1170_v21, %v1174_v0  ;;  %v931_v34 = vadd.f32 %v837_v31, %v563_v3  ;;  %v973_v46 = vrot.slane %v2885_v17, 2  ;;  %v427_v35 = vand.u32 255, %v391_v28 }
  0x32   : > { %v1267_v36 = vadd.f32 %v1175_v37, %v933_v30  ;;  %v1171_v27 = vsel %vm1165_vm14, %v1169_v32, %v1170_v21  ;;  %v566_v38 = vmul.f32 0.34340647, %v2811_v50  ;;  %v640_v39 = vsel %vm628_vm4, %v635_v56, %v639_v33 }
  0x33   : > { %v1265_v42 = vadd.f32 %v1171_v27, %v931_v34  ;;  %v735_v43 = vadd.f32 %v2811_v50, %v640_v39  ;;  %v974_v15 = vsel %vm962_vm7, %v969_v59, %v973_v46  ;;  %v2526_v28 = vcvt.s32.f32 %v427_v35 }
  0x34   : > { %1334 = vrot.lane.b32.xlu1 %v1267_v36, %s2680_s28  ;;  %v1069_v44 = vadd.f32 %v2811_v50, %v974_v15  ;;  %vm333_vm3 = vcmp.ge.s32.totalorder %v2761_v18, 0  ;;  %vm351_vm5 = vcmp.lt.s32.totalorder %v2761_v18, 512  ;;  %v392_v56 = vunpack.c.0.s8 %v2901_v13 }
  0x35   : > { %1330 = vrot.lane.b32.xlu0 %v1265_v42, %s2680_s28  ;;  %v2921_v47 = vmul.f32 0.085629165, %v735_v43  ;;  %v2527_v48 = vsel %vm2873_vm2, %v2526_v28, 0.0  ;;  %v567_v59 = vmul.f32 0.34340647, %v2815_v51  ;;  %v393_v52 = vunpack.c.0.s8 %v2909_v41  ;;  %vm2930_vm6 = vmand %vm333_vm3, %vm351_vm5 }
  0x36   : > { %v2927_v53 = vmul.f32 0.2426676, %v1069_v44  ;;  %v641_v50 = vrot.slane %v2527_v48, 4  ;;  %v975_v55 = vrot.slane %v2527_v48, 2  ;;  %v428_v57 = vand.u32 255, %v392_v56 }
  0x37   : > { %v842_v18 = vrot.slane %v2921_v47, 6  ;;  %v568_v60 = vmul.f32 0.34340647, %v2885_v17  ;;  %v429_v61 = vand.u32 255, %v393_v52  ;;  %v2935_v62 = vmul.f32 0.34340647, %v2527_v48 }
  0x38   : > { %v1176_v63 = vrot.slane %v2927_v53, 7  ;;  %v642_v3 = vsel %vm628_vm4, %v637_v40, %v641_v50  ;;  %v976_v4 = vsel %vm962_vm7, %v971_v54, %v975_v55  ;;  %v2528_v5 = vcvt.s32.f32 %v428_v57 }
  0x39   : > { %v843_v7 = vsel %vm831_vm12, %v838_v26, %v842_v18  ;;  %v736_v8 = vadd.f32 %v2815_v51, %v642_v3  ;;  %v1070_v9 = vadd.f32 %v2815_v51, %v976_v4  ;;  %v2530_v10 = vcvt.s32.f32 %v429_v61 }
  0x3a   : > { %v934_v11 = vadd.f32 %v843_v7, %v566_v38  ;;  %v1177_v45 = vsel %vm1165_vm14, %v1172_v16, %v1176_v63  ;;  %v2529_v40 = vsel %vm2930_vm6, %v2528_v5, 0.0  ;;  %vm334_vm8 = vcmp.ge.s32.totalorder %v2764_v19, 0 }
  0x3b   : > { %v770_v54 = vmul.f32 0.085629165, %v736_v8  ;;  %v1104_v21 = vmul.f32 0.2426676, %v1070_v9  ;;  %v643_v12 = vrot.slane %v2529_v40, 4  ;;  %v977_v23 = vrot.slane %v2529_v40, 2 }
  0x3c   : > { %v1268_v26 = vadd.f32 %v1177_v45, %v934_v11  ;;  %v2531_v24 = vsel %vm2930_vm6, %v2530_v10, 0.0  ;;  %vm352_vm9 = vcmp.lt.s32.totalorder %v2764_v19, 512  ;;  %v394_v51 = vunpack.c.1.s8 %v2901_v13 }
  0x3d   : > { %v844_v22 = vrot.slane %v770_v54, 6  ;;  %v1178_v25 = vrot.slane %v1104_v21, 7  ;;  %v644_v16 = vsel %vm628_vm4, %v639_v33, %v643_v12  ;;  %v978_v49 = vsel %vm962_vm7, %v973_v46, %v977_v23  ;;  %vm2976_vm10 = vmand %vm334_vm8, %vm352_vm9 }
  0x3e   : > { %1336 = vrot.lane.b32.xlu0 %v1268_v26, %s2680_s28  ;;  %v737_v30 = vadd.f32 %v2885_v17, %v644_v16  ;;  %v1071_v31 = vadd.f32 %v2885_v17, %v978_v49  ;;  %v645_v32 = vrot.slane %v2531_v24, 4  ;;  %v979_v37 = vrot.slane %v2531_v24, 2 }
  0x3f   : > { %v845_v34 = vsel %vm831_vm12, %v840_v14, %v844_v22  ;;  %v1179_v35 = vsel %vm1165_vm14, %v1174_v0, %v1178_v25  ;;  %v430_v36 = vand.u32 255, %v394_v51  ;;  %v395_v33 = vunpack.c.1.s8 %v2909_v41 }
  0x40   : > { %v935_v46 = vadd.f32 %v845_v34, %v567_v59  ;;  %v771_v27 = vmul.f32 0.085629165, %v737_v30  ;;  %v1105_v38 = vmul.f32 0.2426676, %v1071_v31  ;;  %v646_v39 = vsel %vm628_vm4, %v641_v50, %v645_v32 }
  0x41   : > { %v738_v14 = vadd.f32 %v2527_v48, %v646_v39  ;;  %v980_v20 = vsel %vm962_vm7, %v975_v55, %v979_v37  ;;  %v2532_v0 = vcvt.s32.f32 %v430_v36  ;;  %v431_v17 = vand.u32 255, %v395_v33 }
  0x42   : > { %v1269_v42 = vadd.f32 %v1179_v35, %v935_v46  ;;  %v846_v43 = vrot.slane %v771_v27, 6  ;;  %v1180_v15 = vrot.slane %v1105_v38, 7  ;;  %v1072_v28 = vadd.f32 %v2527_v48, %v980_v20 }
  0x43   : > { %v772_v44 = vmul.f32 0.085629165, %v738_v14  ;;  %v2983_v56 = vsel %vm2976_vm10, %v2532_v0, 0.0  ;;  %v570_v47 = vmul.f32 0.34340647, %v2529_v40  ;;  %v2534_v19 = vcvt.s32.f32 %v431_v17 }
  0x44   : > { %1338 = vrot.lane.b32.xlu1 %v1269_v42, %s2680_s28  ;;  %v847_v59 = vsel %vm831_vm12, %v842_v18, %v846_v43  ;;  %v1181_v52 = vsel %vm1165_vm14, %v1176_v63, %v1180_v15  ;;  %v1106_v53 = vmul.f32 0.2426676, %v1072_v28  ;;  %v647_v50 = vrot.slane %v2983_v56, 4 }
  0x45   : > { %v936_v55 = vadd.f32 %v847_v59, %v568_v60  ;;  %v848_v57 = vrot.slane %v772_v44, 6  ;;  %v981_v48 = vrot.slane %v2983_v56, 2  ;;  %v2992_v58 = vsel %vm2976_vm10, %v2534_v19, 0.0 }
  0x46   : > { %v1182_v61 = vrot.slane %v1106_v53, 7  ;;  %v648_v3 = vsel %vm628_vm4, %v643_v12, %v647_v50  ;;  %v649_v18 = vrot.slane %v2992_v58, 4  ;;  %v983_v63 = vrot.slane %v2992_v58, 2 }
  0x47   : > { %v1270_v4 = vadd.f32 %v1181_v52, %v936_v55  ;;  %v849_v5 = vsel %vm831_vm12, %v844_v22, %v848_v57  ;;  %v739_v60 = vadd.f32 %v2529_v40, %v648_v3  ;;  %v982_v7 = vsel %vm962_vm7, %v977_v23, %v981_v48 }
  0x48   : > { %v937_v8 = vadd.f32 %v849_v5, %v2935_v62  ;;  %v1183_v9 = vsel %vm1165_vm14, %v1178_v25, %v1182_v61  ;;  %v1073_v10 = vadd.f32 %v2529_v40, %v982_v7  ;;  %v650_v11 = vsel %vm628_vm4, %v645_v32, %v649_v18 }
  0x49   : > { %1340 = vrot.lane.b32.xlu0 %v1270_v4, %s2680_s28  ;;  %v3009_v45 = vmul.f32 0.085629165, %v739_v60  ;;  %v571_v54 = vmul.f32 0.34340647, %v2531_v24  ;;  %v740_v21 = vadd.f32 %v2531_v24, %v650_v11  ;;  %v984_v12 = vsel %vm962_vm7, %v979_v37, %v983_v63 }
  0x4a   : > { %v1271_v23 = vadd.f32 %v1183_v9, %v937_v8  ;;  %v3014_v26 = vmul.f32 0.2426676, %v1073_v10  ;;  %v1074_v62 = vadd.f32 %v2531_v24, %v984_v12  ;;  %vm335_vm11 = vcmp.ge.s32.totalorder %v2889_v29, 0 }
  0x4b   : > { %v850_v40 = vrot.slane %v3009_v45, 6  ;;  %v3018_v51 = vmul.f32 0.085629165, %v740_v21  ;;  %vm353_vm13 = vcmp.lt.s32.totalorder %v2889_v29, 512  ;;  %v396_v22 = vunpack.c.2.s8 %v2901_v13 }
  0x4c   : > { %1342 = vrot.lane.b32.xlu1 %v1271_v23, %s2680_s28  ;;  %v1184_v25 = vrot.slane %v3014_v26, 7  ;;  %v3024_v16 = vmul.f32 0.2426676, %v1074_v62  ;;  %v3027_v49 = vmul.f32 0.34340647, %v2983_v56  ;;  %v397_v24 = vunpack.c.2.s8 %v2909_v41  ;;  %vm3041_vm15 = vmand %vm335_vm11, %vm353_vm13 }
  0x4d   : > { %v851_v30 = vsel %vm831_vm12, %v846_v43, %v850_v40  ;;  %v852_v31 = vrot.slane %v3018_v51, 6  ;;  %v432_v32 = vand.u32 255, %v396_v22  ;;  %v299_v37 = vadd.s32 88, %v2719_v1  ;;  %v3129_v51 = vld [vmem:[%s2739_s22 + $0x28] sm:$0xff] }
  0x4e   : > { %v938_v34 = vadd.f32 %v851_v30, %v570_v47  ;;  %v1185_v35 = vsel %vm1165_vm14, %v1180_v15, %v1184_v25  ;;  %v1186_v36 = vrot.slane %v3024_v16, 7  ;;  %v433_v46 = vand.u32 255, %v397_v24 }
  0x4f   : > { %v853_v27 = vsel %vm831_vm12, %v848_v57, %v852_v31  ;;  %v2536_v38 = vcvt.s32.f32 %v432_v32  ;;  %v318_v39 = vadd.s32 %v2725_v2, %v299_v37  ;;  %v398_v6 = vunpack.c.3.s8 %v2901_v13 }
  0x50   : > { %v1272_v14 = vadd.f32 %v1185_v35, %v938_v34  ;;  %v939_v20 = vadd.f32 %v853_v27, %v571_v54  ;;  %v1187_v0 = vsel %vm1165_vm14, %v1182_v61, %v1186_v36  ;;  %v2538_v17 = vcvt.s32.f32 %v433_v46 }
  0x51   : > { %v2537_v29 = vsel %vm3041_vm15, %v2536_v38, 0.0  ;;  %vm336_vm0 = vcmp.ge.s32.totalorder %v318_v39, 0  ;;  %vm354_vm1 = vcmp.lt.s32.totalorder %v318_v39, 512  ;;  %v434_v42 = vand.u32 255, %v398_v6  ;;  %v3125_v38 = vld [vmem:[%s2739_s22 + $0x20] sm:$0xff] }
  0x52   : > { %1344 = vrot.lane.b32.xlu0 %v1272_v14, %s2680_s28  ;;  %v1273_v43 = vadd.f32 %v1187_v0, %v939_v20  ;;  %v651_v15 = vrot.slane %v2537_v29, 4  ;;  %v985_v28 = vrot.slane %v2537_v29, 2  ;;  %v3056_v44 = vsel %vm3041_vm15, %v2538_v17, 0.0  ;;  %vm3061_vm2 = vmand %vm336_vm0, %vm354_vm1 }
  0x53   : > { %v573_v13 = vmul.f32 0.34340647, %v2992_v58  ;;  %v653_v47 = vrot.slane %v3056_v44, 4  ;;  %v987_v19 = vrot.slane %v3056_v44, 2  ;;  %v2540_v52 = vcvt.s32.f32 %v434_v42 }
  0x54   : > { %1346 = vrot.lane.b32.xlu1 %v1273_v43, %s2680_s28  ;;  %v652_v53 = vsel %vm628_vm4, %v647_v50, %v651_v15  ;;  %v986_v55 = vsel %vm962_vm7, %v981_v48, %v985_v28  ;;  %v574_v57 = vmul.f32 0.34340647, %v2537_v29  ;;  %v399_v61 = vunpack.c.3.s8 %v2909_v41 }
  0x55   : > { %v741_v3 = vadd.f32 %v2983_v56, %v652_v53  ;;  %v1075_v4 = vadd.f32 %v2983_v56, %v986_v55  ;;  %v654_v5 = vsel %vm628_vm4, %v649_v18, %v653_v47  ;;  %v988_v60 = vsel %vm962_vm7, %v983_v63, %v987_v19 }
  0x56   : > { %v742_v50 = vadd.f32 %v2992_v58, %v654_v5  ;;  %v1076_v7 = vadd.f32 %v2992_v58, %v988_v60  ;;  %v3085_v48 = vsel %vm3061_vm2, %v2540_v52, 0.0  ;;  %v435_v41 = vand.u32 255, %v399_v61 }
  0x57   : > { %v775_v8 = vmul.f32 0.085629165, %v741_v3  ;;  %v1109_v9 = vmul.f32 0.2426676, %v1075_v4  ;;  %v655_v56 = vrot.slane %v3085_v48, 4  ;;  %v989_v10 = vrot.slane %v3085_v48, 2 }
  0x58   : > { %v3089_v18 = vmul.f32 0.085629165, %v742_v50  ;;  %v3091_v11 = vmul.f32 0.2426676, %v1076_v7  ;;  %v2542_v63 = vcvt.s32.f32 %v435_v41  ;;  %v300_v54 = vadd.s32 96, %v2719_v1 }
  0x59   : > { %v854_v21 = vrot.slane %v775_v8, 6  ;;  %v1188_v58 = vrot.slane %v1109_v9, 7  ;;  %v656_v12 = vsel %vm628_vm4, %v651_v15, %v655_v56  ;;  %v990_v23 = vsel %vm962_vm7, %v985_v28, %v989_v10 }
  0x5a   : > { %v856_v62 = vrot.slane %v3089_v18, 6  ;;  %v1190_v22 = vrot.slane %v3091_v11, 7  ;;  %v743_v16 = vadd.f32 %v2537_v29, %v656_v12  ;;  %v1077_v24 = vadd.f32 %v2537_v29, %v990_v23 }
  0x5b   : > { %v855_v30 = vsel %vm831_vm12, %v850_v40, %v854_v21  ;;  %v1189_v32 = vsel %vm1165_vm14, %v1184_v25, %v1188_v58  ;;  %v3110_v37 = vsel %vm3061_vm2, %v2542_v63, 0.0  ;;  %v319_v34 = vadd.s32 %v2725_v2, %v300_v54 }
  0x5c   : > { %v940_v35 = vadd.f32 %v855_v30, %v3027_v49  ;;  %v857_v33 = vsel %vm831_vm12, %v852_v31, %v856_v62  ;;  %v1191_v45 = vsel %vm1165_vm14, %v1186_v36, %v1190_v22  ;;  %v3118_v40 = vmul.f32 0.085629165, %v743_v16 }
  0x5d   : > { %v941_v26 = vadd.f32 %v857_v33, %v573_v13  ;;  %v3120_v46 = vmul.f32 0.2426676, %v1077_v24  ;;  %v657_v25 = vrot.slane %v3110_v37, 4  ;;  %v991_v27 = vrot.slane %v3110_v37, 2 }
  0x5e   : > { %v1274_v39 = vadd.f32 %v1189_v32, %v940_v35  ;;  %v858_v49 = vrot.slane %v3118_v40, 6  ;;  %vm337_vm3 = vcmp.ge.s32.totalorder %v319_v34, 0  ;;  %vm355_vm5 = vcmp.lt.s32.totalorder %v319_v34, 512 }
  0x5f   : > { %v1275_v31 = vadd.f32 %v1191_v45, %v941_v26  ;;  %v1192_v36 = vrot.slane %v3120_v46, 7  ;;  %v658_v6 = vsel %vm628_vm4, %v653_v47, %v657_v25  ;;  %v992_v14 = vsel %vm962_vm7, %v987_v19, %v991_v27  ;;  %vm3154_vm6 = vmand %vm337_vm3, %vm355_vm5 }
  0x60   : > { %1348 = vrot.lane.b32.xlu0 %v1274_v39, %s2680_s28  ;;  %v859_v20 = vsel %vm831_vm12, %v854_v21, %v858_v49  ;;  %v744_v0 = vadd.f32 %v3056_v44, %v658_v6  ;;  %v1078_v17 = vadd.f32 %v3056_v44, %v992_v14  ;;  %v400_v29 = vunpack.c.0.s8 %v3125_v38 }
  0x61   : > { %1350 = vrot.lane.b32.xlu1 %v1275_v31, %s2680_s28  ;;  %v942_v42 = vadd.f32 %v859_v20, %v574_v57  ;;  %v1193_v43 = vsel %vm1165_vm14, %v1188_v58, %v1192_v36  ;;  %v575_v15 = vmul.f32 0.34340647, %v3056_v44  ;;  %v401_v28 = vunpack.c.0.s8 %v3129_v51 }
  0x62   : > { %v3147_v13 = vmul.f32 0.085629165, %v744_v0  ;;  %v3149_v47 = vmul.f32 0.2426676, %v1078_v17  ;;  %v436_v19 = vand.u32 255, %v400_v29  ;;  %v301_v59 = vadd.s32 104, %v2719_v1 }
  0x63   : > { %v1276_v52 = vadd.f32 %v1193_v43, %v942_v42  ;;  %v576_v55 = vmul.f32 0.34340647, %v3085_v48  ;;  %v437_v57 = vand.u32 255, %v401_v28  ;;  %v402_v44 = vunpack.c.1.s8 %v3125_v38 }
  0x64   : > { %v860_v61 = vrot.slane %v3147_v13, 6  ;;  %v1194_v3 = vrot.slane %v3149_v47, 7  ;;  %v2544_v4 = vcvt.s32.f32 %v436_v19  ;;  %v320_v5 = vadd.s32 %v2725_v2, %v301_v59 }
  0x65   : > { %1352 = vrot.lane.b32.xlu0 %v1276_v52, %s2680_s28  ;;  %v2546_v60 = vcvt.s32.f32 %v437_v57  ;;  %v577_v50 = vmul.f32 0.34340647, %v3110_v37  ;;  %v438_v7 = vand.u32 255, %v402_v44  ;;  %v403_v41 = vunpack.c.1.s8 %v3129_v51 }
  0x66   : > { %v861_v8 = vsel %vm831_vm12, %v856_v62, %v860_v61  ;;  %v1195_v9 = vsel %vm1165_vm14, %v1190_v22, %v1194_v3  ;;  %v2545_v18 = vsel %vm3154_vm6, %v2544_v4, 0.0  ;;  %vm338_vm8 = vcmp.ge.s32.totalorder %v320_v5, 0 }
  0x67   : > { %v943_v11 = vadd.f32 %v861_v8, %v575_v15  ;;  %v659_v63 = vrot.slane %v2545_v18, 4  ;;  %v993_v54 = vrot.slane %v2545_v18, 2  ;;  %v3172_v21 = vsel %vm3154_vm6, %v2546_v60, 0.0 }
  0x68   : > { %v661_v58 = vrot.slane %v3172_v21, 4  ;;  %v995_v12 = vrot.slane %v3172_v21, 2  ;;  %vm356_vm9 = vcmp.lt.s32.totalorder %v320_v5, 512  ;;  %v2548_v23 = vcvt.s32.f32 %v438_v7 }
  0x69   : > { %v1277_v62 = vadd.f32 %v1195_v9, %v943_v11  ;;  %v660_v22 = vsel %vm628_vm4, %v655_v56, %v659_v63  ;;  %v994_v16 = vsel %vm962_vm7, %v989_v10, %v993_v54  ;;  %vm3182_vm10 = vmand %vm338_vm8, %vm356_vm9  ;;  %v302_v30 = vadd.s32 112, %v2719_v1 }
  0x6a   : > { %v745_v32 = vadd.f32 %v3085_v48, %v660_v22  ;;  %v1079_v34 = vadd.f32 %v3085_v48, %v994_v16  ;;  %v662_v35 = vsel %vm628_vm4, %v657_v25, %v661_v58  ;;  %v996_v33 = vsel %vm962_vm7, %v991_v27, %v995_v12 }
  0x6b   : > { %1354 = vrot.lane.b32.xlu1 %v1277_v62, %s2680_s28  ;;  %v746_v56 = vadd.f32 %v3110_v37, %v662_v35  ;;  %v1080_v10 = vadd.f32 %v3110_v37, %v996_v33  ;;  %v3196_v45 = vsel %vm3182_vm10, %v2548_v23, 0.0  ;;  %v439_v26 = vand.u32 255, %v403_v41 }
  0x6c   : > { %v779_v39 = vmul.f32 0.085629165, %v745_v32  ;;  %v1113_v31 = vmul.f32 0.2426676, %v1079_v34  ;;  %v663_v6 = vrot.slane %v3196_v45, 4  ;;  %v997_v48 = vrot.slane %v3196_v45, 2 }
  0x6d   : > { %v780_v25 = vmul.f32 0.085629165, %v746_v56  ;;  %v1114_v14 = vmul.f32 0.2426676, %v1080_v10  ;;  %v578_v27 = vmul.f32 0.34340647, %v2545_v18  ;;  %v2550_v20 = vcvt.s32.f32 %v439_v26 }
  0x6e   : > { %v862_v0 = vrot.slane %v779_v39, 6  ;;  %v1196_v17 = vrot.slane %v1113_v31, 7  ;;  %v664_v37 = vsel %vm628_vm4, %v659_v63, %v663_v6  ;;  %v998_v29 = vsel %vm962_vm7, %v993_v54, %v997_v48 }
  0x6f   : > { %v864_v42 = vrot.slane %v780_v25, 6  ;;  %v1198_v43 = vrot.slane %v1114_v14, 7  ;;  %v747_v15 = vadd.f32 %v2545_v18, %v664_v37  ;;  %v1081_v28 = vadd.f32 %v2545_v18, %v998_v29 }
  0x70   : > { %v863_v13 = vsel %vm831_vm12, %v858_v49, %v862_v0  ;;  %v1197_v47 = vsel %vm1165_vm14, %v1192_v36, %v1196_v17  ;;  %v3214_v19 = vsel %vm3182_vm10, %v2550_v20, 0.0  ;;  %v321_v59 = vadd.s32 %v2725_v2, %v302_v30 }
  0x71   : > { %v944_v52 = vadd.f32 %v863_v13, %v576_v55  ;;  %v865_v53 = vsel %vm831_vm12, %v860_v61, %v864_v42  ;;  %v1199_v57 = vsel %vm1165_vm14, %v1194_v3, %v1198_v43  ;;  %v3219_v44 = vmul.f32 0.085629165, %v747_v15 }
  0x72   : > { %v945_v40 = vadd.f32 %v865_v53, %v577_v50  ;;  %v3221_v4 = vmul.f32 0.2426676, %v1081_v28  ;;  %v665_v46 = vrot.slane %v3214_v19, 4  ;;  %v999_v49 = vrot.slane %v3214_v19, 2 }
  0x73   : > { %v1278_v36 = vadd.f32 %v1197_v47, %v944_v52  ;;  %v866_v5 = vrot.slane %v3219_v44, 6  ;;  %vm339_vm11 = vcmp.ge.s32.totalorder %v321_v59, 0  ;;  %vm357_vm13 = vcmp.lt.s32.totalorder %v321_v59, 512 }
  0x74   : > { %v1279_v60 = vadd.f32 %v1199_v57, %v945_v40  ;;  %v1200_v55 = vrot.slane %v3221_v4, 7  ;;  %v666_v61 = vsel %vm628_vm4, %v661_v58, %v665_v46  ;;  %v1000_v3 = vsel %vm962_vm7, %v995_v12, %v999_v49  ;;  %vm3249_vm15 = vmand %vm339_vm11, %vm357_vm13 }
  0x75   : > { %1356 = vrot.lane.b32.xlu0 %v1278_v36, %s2680_s28  ;;  %v867_v50 = vsel %vm831_vm12, %v862_v0, %v866_v5  ;;  %v748_v7 = vadd.f32 %v3172_v21, %v666_v61  ;;  %v1082_v41 = vadd.f32 %v3172_v21, %v1000_v3  ;;  %v404_v8 = vunpack.c.2.s8 %v3125_v38 }
  0x76   : > { %1358 = vrot.lane.b32.xlu1 %v1279_v60, %s2680_s28  ;;  %v946_v9 = vadd.f32 %v867_v50, %v578_v27  ;;  %v1201_v18 = vsel %vm1165_vm14, %v1196_v17, %v1200_v55  ;;  %v579_v11 = vmul.f32 0.34340647, %v3172_v21  ;;  %v405_v63 = vunpack.c.2.s8 %v3129_v51 }
  0x77   : > { %v3242_v54 = vmul.f32 0.085629165, %v748_v7  ;;  %v3244_v58 = vmul.f32 0.2426676, %v1082_v41  ;;  %v440_v12 = vand.u32 255, %v404_v8  ;;  %v303_v23 = vadd.s32 120, %v2719_v1 }
  0x78   : > { %v1280_v62 = vadd.f32 %v1201_v18, %v946_v9  ;;  %v580_v16 = vmul.f32 0.34340647, %v3196_v45  ;;  %v441_v24 = vand.u32 255, %v405_v63  ;;  %v406_v21 = vunpack.c.3.s8 %v3125_v38 }
  0x79   : > { %v868_v30 = vrot.slane %v3242_v54, 6  ;;  %v1202_v32 = vrot.slane %v3244_v58, 7  ;;  %v2552_v34 = vcvt.s32.f32 %v440_v12  ;;  %v322_v35 = vadd.s32 %v2725_v2, %v303_v23 }
  0x7a   : > { %1360 = vrot.lane.b32.xlu0 %v1280_v62, %s2680_s28  ;;  %v2554_v33 = vcvt.s32.f32 %v441_v24  ;;  %v581_v56 = vmul.f32 0.34340647, %v3214_v19  ;;  %v442_v10 = vand.u32 255, %v406_v21  ;;  %v407_v26 = vunpack.c.3.s8 %v3129_v51  ;;  %v3327_v24 = vld [vmem:[%s2739_s22 + $0x30] sm:$0xff] }
  0x7b   : > { %v869_v39 = vsel %vm831_vm12, %v864_v42, %v868_v30  ;;  %v1203_v31 = vsel %vm1165_vm14, %v1198_v43, %v1202_v32  ;;  %v2553_v38 = vsel %vm3249_vm15, %v2552_v34, 0.0  ;;  %vm340_vm0 = vcmp.ge.s32.totalorder %v322_v35, 0 }
  0x7c   : > { %v947_v25 = vadd.f32 %v869_v39, %v579_v11  ;;  %v667_v14 = vrot.slane %v2553_v38, 4  ;;  %v1001_v27 = vrot.slane %v2553_v38, 2  ;;  %v3267_v20 = vsel %vm3249_vm15, %v2554_v33, 0.0 }
  0x7d   : > { %v669_v0 = vrot.slane %v3267_v20, 4  ;;  %v1003_v17 = vrot.slane %v3267_v20, 2  ;;  %vm358_vm1 = vcmp.lt.s32.totalorder %v322_v35, 512  ;;  %v2556_v51 = vcvt.s32.f32 %v442_v10 }
  0x7e   : > { %v1281_v37 = vadd.f32 %v1203_v31, %v947_v25  ;;  %v668_v29 = vsel %vm628_vm4, %v663_v6, %v667_v14  ;;  %v1002_v42 = vsel %vm962_vm7, %v997_v48, %v1001_v27  ;;  %vm3277_vm2 = vmand %vm340_vm0, %vm358_vm1  ;;  %v304_v15 = vadd.s32 128, %v2719_v1 }
  0x7f   : > { %v749_v28 = vadd.f32 %v3196_v45, %v668_v29  ;;  %v1083_v13 = vadd.f32 %v3196_v45, %v1002_v42  ;;  %v670_v47 = vsel %vm628_vm4, %v665_v46, %v669_v0  ;;  %v1004_v59 = vsel %vm962_vm7, %v999_v49, %v1003_v17 }
  0x80   : > { %1362 = vrot.lane.b32.xlu1 %v1281_v37, %s2680_s28  ;;  %v750_v6 = vadd.f32 %v3214_v19, %v670_v47  ;;  %v1084_v48 = vadd.f32 %v3214_v19, %v1004_v59  ;;  %v3291_v52 = vsel %vm3277_vm2, %v2556_v51, 0.0  ;;  %v443_v53 = vand.u32 255, %v407_v26 }
  0x81   : > { %v783_v57 = vmul.f32 0.085629165, %v749_v28  ;;  %v1117_v40 = vmul.f32 0.2426676, %v1083_v13  ;;  %v671_v36 = vrot.slane %v3291_v52, 4  ;;  %v1005_v45 = vrot.slane %v3291_v52, 2 }
  0x82   : > { %v3295_v46 = vmul.f32 0.085629165, %v750_v6  ;;  %v3297_v49 = vmul.f32 0.2426676, %v1084_v48  ;;  %v582_v60 = vmul.f32 0.34340647, %v2553_v38  ;;  %v2558_v61 = vcvt.s32.f32 %v443_v53 }
  0x83   : > { %v870_v3 = vrot.slane %v783_v57, 6  ;;  %v1204_v50 = vrot.slane %v1117_v40, 7  ;;  %v672_v19 = vsel %vm628_vm4, %v667_v14, %v671_v36  ;;  %v1006_v7 = vsel %vm962_vm7, %v1001_v27, %v1005_v45 }
  0x84   : > { %v872_v41 = vrot.slane %v3295_v46, 6  ;;  %v1206_v8 = vrot.slane %v3297_v49, 7  ;;  %v751_v9 = vadd.f32 %v2553_v38, %v672_v19  ;;  %v1085_v18 = vadd.f32 %v2553_v38, %v1006_v7 }
  0x85   : > { %v871_v11 = vsel %vm831_vm12, %v866_v5, %v870_v3  ;;  %v1205_v63 = vsel %vm1165_vm14, %v1200_v55, %v1204_v50  ;;  %v3315_v54 = vsel %vm3277_vm2, %v2558_v61, 0.0  ;;  %v323_v58 = vadd.s32 %v2725_v2, %v304_v15 }
  0x86   : > { %v948_v12 = vadd.f32 %v871_v11, %v580_v16  ;;  %v873_v23 = vsel %vm831_vm12, %v868_v30, %v872_v41  ;;  %v1207_v62 = vsel %vm1165_vm14, %v1202_v32, %v1206_v8  ;;  %v3320_v22 = vmul.f32 0.085629165, %v751_v9  ;;  %v3331_v16 = vld [vmem:[%s2739_s22 + $0x38] sm:$0xff] }
  0x87   : > { %v949_v44 = vadd.f32 %v873_v23, %v581_v56  ;;  %v3322_v5 = vmul.f32 0.2426676, %v1085_v18  ;;  %v673_v4 = vrot.slane %v3315_v54, 4  ;;  %v1007_v55 = vrot.slane %v3315_v54, 2 }
  0x88   : > { %v1282_v21 = vadd.f32 %v1205_v63, %v948_v12  ;;  %v874_v34 = vrot.slane %v3320_v22, 6  ;;  %vm341_vm3 = vcmp.ge.s32.totalorder %v323_v58, 0  ;;  %vm359_vm5 = vcmp.lt.s32.totalorder %v323_v58, 512 }
  0x89   : > { %v1283_v30 = vadd.f32 %v1207_v62, %v949_v44  ;;  %v1208_v32 = vrot.slane %v3322_v5, 7  ;;  %v674_v35 = vsel %vm628_vm4, %v669_v0, %v673_v4  ;;  %v1008_v33 = vsel %vm962_vm7, %v1003_v17, %v1007_v55  ;;  %vm3356_vm6 = vmand %vm341_vm3, %vm359_vm5 }
  0x8a   : > { %1364 = vrot.lane.b32.xlu0 %v1282_v21, %s2680_s28  ;;  %v875_v56 = vsel %vm831_vm12, %v870_v3, %v874_v34  ;;  %v752_v10 = vadd.f32 %v3267_v20, %v674_v35  ;;  %v1086_v26 = vadd.f32 %v3267_v20, %v1008_v33  ;;  %v408_v39 = vunpack.c.0.s8 %v3327_v24 }
  0x8b   : > { %1366 = vrot.lane.b32.xlu1 %v1283_v30, %s2680_s28  ;;  %v950_v31 = vadd.f32 %v875_v56, %v582_v60  ;;  %v1209_v38 = vsel %vm1165_vm14, %v1204_v50, %v1208_v32  ;;  %v583_v25 = vmul.f32 0.34340647, %v3267_v20  ;;  %v409_v14 = vunpack.c.0.s8 %v3331_v16 }
  0x8c   : > { %v3349_v27 = vmul.f32 0.085629165, %v752_v10  ;;  %v3351_v0 = vmul.f32 0.2426676, %v1086_v26  ;;  %v444_v17 = vand.u32 255, %v408_v39  ;;  %v305_v51 = vadd.s32 136, %v2719_v1 }
  0x8d   : > { %v1284_v37 = vadd.f32 %v1209_v38, %v950_v31  ;;  %v584_v42 = vmul.f32 0.34340647, %v3291_v52  ;;  %v445_v43 = vand.u32 255, %v409_v14  ;;  %v410_v20 = vunpack.c.1.s8 %v3327_v24 }
  0x8e   : > { %v876_v15 = vrot.slane %v3349_v27, 6  ;;  %v1210_v28 = vrot.slane %v3351_v0, 7  ;;  %v2560_v13 = vcvt.s32.f32 %v444_v17  ;;  %v324_v47 = vadd.s32 %v2725_v2, %v305_v51 }
  0x8f   : > { %1368 = vrot.lane.b32.xlu0 %v1284_v37, %s2680_s28  ;;  %v2562_v59 = vcvt.s32.f32 %v445_v43  ;;  %v585_v6 = vmul.f32 0.34340647, %v3315_v54  ;;  %v446_v48 = vand.u32 255, %v410_v20  ;;  %v411_v53 = vunpack.c.1.s8 %v3331_v16 }
  0x90   : > { %v877_v57 = vsel %vm831_vm12, %v872_v41, %v876_v15  ;;  %v1211_v40 = vsel %vm1165_vm14, %v1206_v8, %v1210_v28  ;;  %v2561_v46 = vsel %vm3356_vm6, %v2560_v13, 0.0  ;;  %vm342_vm8 = vcmp.ge.s32.totalorder %v324_v47, 0 }
  0x91   : > { %v951_v49 = vadd.f32 %v877_v57, %v583_v25  ;;  %v675_v60 = vrot.slane %v2561_v46, 4  ;;  %v1009_v61 = vrot.slane %v2561_v46, 2  ;;  %v3374_v3 = vsel %vm3356_vm6, %v2562_v59, 0.0 }
  0x92   : > { %v677_v50 = vrot.slane %v3374_v3, 4  ;;  %v1011_v19 = vrot.slane %v3374_v3, 2  ;;  %vm360_vm9 = vcmp.lt.s32.totalorder %v324_v47, 512  ;;  %v2564_v7 = vcvt.s32.f32 %v446_v48 }
  0x93   : > { %v1285_v41 = vadd.f32 %v1211_v40, %v951_v49  ;;  %v676_v8 = vsel %vm628_vm4, %v671_v36, %v675_v60  ;;  %v1010_v9 = vsel %vm962_vm7, %v1005_v45, %v1009_v61  ;;  %vm3384_vm10 = vmand %vm342_vm8, %vm360_vm9  ;;  %v306_v11 = vadd.s32 144, %v2719_v1 }
  0x94   : > { %v753_v63 = vadd.f32 %v3291_v52, %v676_v8  ;;  %v1087_v58 = vadd.f32 %v3291_v52, %v1010_v9  ;;  %v678_v12 = vsel %vm628_vm4, %v673_v4, %v677_v50  ;;  %v1012_v23 = vsel %vm962_vm7, %v1007_v55, %v1011_v19 }
  0x95   : > { %1370 = vrot.lane.b32.xlu1 %v1285_v41, %s2680_s28  ;;  %v754_v36 = vadd.f32 %v3315_v54, %v678_v12  ;;  %v1088_v45 = vadd.f32 %v3315_v54, %v1012_v23  ;;  %v3398_v62 = vsel %vm3384_vm10, %v2564_v7, 0.0  ;;  %v447_v44 = vand.u32 255, %v411_v53 }
  0x96   : > { %v787_v21 = vmul.f32 0.085629165, %v753_v63  ;;  %v1121_v30 = vmul.f32 0.2426676, %v1087_v58  ;;  %v679_v35 = vrot.slane %v3398_v62, 4  ;;  %v1013_v52 = vrot.slane %v3398_v62, 2 }
  0x97   : > { %v3402_v4 = vmul.f32 0.085629165, %v754_v36  ;;  %v3404_v55 = vmul.f32 0.2426676, %v1088_v45  ;;  %v586_v33 = vmul.f32 0.34340647, %v2561_v46  ;;  %v2566_v56 = vcvt.s32.f32 %v447_v44 }
  0x98   : > { %v878_v10 = vrot.slane %v787_v21, 6  ;;  %v1212_v54 = vrot.slane %v1121_v30, 7  ;;  %v680_v26 = vsel %vm628_vm4, %v675_v60, %v679_v35  ;;  %v1014_v39 = vsel %vm962_vm7, %v1009_v61, %v1013_v52 }
  0x99   : > { %v880_v31 = vrot.slane %v3402_v4, 6  ;;  %v1214_v38 = vrot.slane %v3404_v55, 7  ;;  %v755_v25 = vadd.f32 %v2561_v46, %v680_v26  ;;  %v1089_v14 = vadd.f32 %v2561_v46, %v1014_v39 }
  0x9a   : > { %v879_v27 = vsel %vm831_vm12, %v874_v34, %v878_v10  ;;  %v1213_v0 = vsel %vm1165_vm14, %v1208_v32, %v1212_v54  ;;  %v3422_v17 = vsel %vm3384_vm10, %v2566_v56, 0.0  ;;  %v325_v51 = vadd.s32 %v2725_v2, %v306_v11 }
  0x9b   : > { %v952_v37 = vadd.f32 %v879_v27, %v584_v42  ;;  %v881_v29 = vsel %vm831_vm12, %v876_v15, %v880_v31  ;;  %v1215_v43 = vsel %vm1165_vm14, %v1210_v28, %v1214_v38  ;;  %v3427_v20 = vmul.f32 0.085629165, %v755_v25 }
  0x9c   : > { %v953_v22 = vadd.f32 %v881_v29, %v585_v6  ;;  %v3430_v34 = vmul.f32 0.2426676, %v1089_v14  ;;  %v681_v5 = vrot.slane %v3422_v17, 4  ;;  %v1015_v32 = vrot.slane %v3422_v17, 2 }
  0x9d   : > { %v1286_v13 = vadd.f32 %v1213_v0, %v952_v37  ;;  %v882_v47 = vrot.slane %v3427_v20, 6  ;;  %vm343_vm11 = vcmp.ge.s32.totalorder %v325_v51, 0  ;;  %vm361_vm13 = vcmp.lt.s32.totalorder %v325_v51, 512  ;;  %v285_v20 = vld [vmem:[%s263_s7] ss:$8 sps:$2 sm:$0xf]  }
  0x9e   : > { %v1287_v42 = vadd.f32 %v1215_v43, %v953_v22  ;;  %v1216_v15 = vrot.slane %v3430_v34, 7  ;;  %v682_v28 = vsel %vm628_vm4, %v677_v50, %v681_v5  ;;  %v1016_v59 = vsel %vm962_vm7, %v1011_v19, %v1015_v32  ;;  %vm3464_vm15 = vmand %vm343_vm11, %vm361_vm13 }
  0x9f   : > { %1372 = vrot.lane.b32.xlu0 %v1286_v13, %s2680_s28  ;;  %v883_v6 = vsel %vm831_vm12, %v878_v10, %v882_v47  ;;  %v756_v48 = vadd.f32 %v3374_v3, %v682_v28  ;;  %v1090_v53 = vadd.f32 %v3374_v3, %v1016_v59  ;;  %v412_v57 = vunpack.c.2.s8 %v3327_v24 }
  0xa0   : > { %1374 = vrot.lane.b32.xlu1 %v1287_v42, %s2680_s28  ;;  %v954_v40 = vadd.f32 %v883_v6, %v586_v33  ;;  %v1217_v46 = vsel %vm1165_vm14, %v1212_v54, %v1216_v15  ;;  %v587_v49 = vmul.f32 0.34340647, %v3374_v3  ;;  %v413_v60 = vunpack.c.2.s8 %v3331_v16 }
  0xa1   : > { %v3457_v61 = vmul.f32 0.085629165, %v756_v48  ;;  %v3459_v50 = vmul.f32 0.2426676, %v1090_v53  ;;  %v448_v19 = vand.u32 255, %v412_v57  ;;  %v307_v7 = vadd.s32 152, %v2719_v1 }
  0xa2   : > { %v1288_v41 = vadd.f32 %v1217_v46, %v954_v40  ;;  %v588_v9 = vmul.f32 0.34340647, %v3398_v62  ;;  %v449_v18 = vand.u32 255, %v413_v60  ;;  %v414_v3 = vunpack.c.3.s8 %v3327_v24 }
  0xa3   : > { %v884_v11 = vrot.slane %v3457_v61, 6  ;;  %v1218_v63 = vrot.slane %v3459_v50, 7  ;;  %v2568_v58 = vcvt.s32.f32 %v448_v19  ;;  %v326_v12 = vadd.s32 %v2725_v2, %v307_v7 }
  0xa4   : > { %1376 = vrot.lane.b32.xlu0 %v1288_v41, %s2680_s28  ;;  %v2570_v23 = vcvt.s32.f32 %v449_v18  ;;  %v589_v36 = vmul.f32 0.34340647, %v3422_v17  ;;  %v450_v45 = vand.u32 255, %v414_v3  ;;  %v415_v24 = vunpack.c.3.s8 %v3331_v16 }
  0xa5   : > { %v885_v44 = vsel %vm831_vm12, %v880_v31, %v884_v11  ;;  %v1219_v21 = vsel %vm1165_vm14, %v1214_v38, %v1218_v63  ;;  %v2569_v30 = vsel %vm3464_vm15, %v2568_v58, 0.0  ;;  %vm344_vm0 = vcmp.ge.s32.totalorder %v326_v12, 0 }
  0xa6   : > { %v955_v4 = vadd.f32 %v885_v44, %v587_v49  ;;  %v683_v55 = vrot.slane %v2569_v30, 4  ;;  %v1017_v33 = vrot.slane %v2569_v30, 2  ;;  %v3488_v56 = vsel %vm3464_vm15, %v2570_v23, 0.0 }
  0xa7   : > { %v685_v10 = vrot.slane %v3488_v56, 4  ;;  %v1019_v16 = vrot.slane %v3488_v56, 2  ;;  %vm362_vm1 = vcmp.lt.s32.totalorder %v326_v12, 512  ;;  %v2572_v54 = vcvt.s32.f32 %v450_v45 }
  0xa8   : > { %v1289_v26 = vadd.f32 %v1219_v21, %v955_v4  ;;  %v684_v39 = vsel %vm628_vm4, %v679_v35, %v683_v55  ;;  %v1018_v31 = vsel %vm962_vm7, %v1013_v52, %v1017_v33  ;;  %vm3501_vm2 = vmand %vm344_vm0, %vm362_vm1  ;;  %v308_v25 = vadd.s32 160, %v2719_v1 }
  0xa9   : > { %v757_v14 = vadd.f32 %v3398_v62, %v684_v39  ;;  %v1091_v27 = vadd.f32 %v3398_v62, %v1018_v31  ;;  %v686_v0 = vsel %vm628_vm4, %v681_v5, %v685_v10  ;;  %v1020_v51 = vsel %vm962_vm7, %v1015_v32, %v1019_v16 }
  0xaa   : > { %1378 = vrot.lane.b32.xlu1 %v1289_v26, %s2680_s28  ;;  %v758_v35 = vadd.f32 %v3422_v17, %v686_v0  ;;  %v1092_v52 = vadd.f32 %v3422_v17, %v1020_v51  ;;  %v3515_v37 = vsel %vm3501_vm2, %v2572_v54, 0.0  ;;  %v451_v29 = vand.u32 255, %v415_v24 }
  0xab   : > { %v791_v1 = vmul.f32 0.085629165, %v757_v14  ;;  %v1125_v43 = vmul.f32 0.2426676, %v1091_v27  ;;  %v687_v62 = vrot.slane %v3515_v37, 4  ;;  %v1021_v22 = vrot.slane %v3515_v37, 2 }
  0xac   : > { %v792_v5 = vmul.f32 0.085629165, %v758_v35  ;;  %v1126_v32 = vmul.f32 0.2426676, %v1092_v52  ;;  %v590_v13 = vmul.f32 0.34340647, %v2569_v30  ;;  %v2574_v42 = vcvt.s32.f32 %v451_v29  ;;  %v1329_v35 = vpop.permute.xlu0 %1328 }
  0xad   : > { %v886_v28 = vrot.slane %v791_v1, 6  ;;  %v1220_v59 = vrot.slane %v1125_v43, 7  ;;  %v688_v17 = vsel %vm628_vm4, %v683_v55, %v687_v62  ;;  %v1022_v6 = vsel %vm962_vm7, %v1017_v33, %v1021_v22 }
  0xae   : > { %v888_v48 = vrot.slane %v792_v5, 6  ;;  %v1222_v53 = vrot.slane %v1126_v32, 7  ;;  %v759_v57 = vadd.f32 %v2569_v30, %v688_v17  ;;  %v1093_v40 = vadd.f32 %v2569_v30, %v1022_v6 }
  0xaf   : > { %v887_v46 = vsel %vm831_vm12, %v882_v47, %v886_v28  ;;  %v1221_v49 = vsel %vm1165_vm14, %v1216_v15, %v1220_v59  ;;  %v3536_v60 = vsel %vm3501_vm2, %v2574_v42, 0.0  ;;  %v327_v61 = vadd.s32 %v2725_v2, %v308_v25 }
  0xb0   : > { %v956_v50 = vadd.f32 %v887_v46, %v588_v9  ;;  %v889_v19 = vsel %vm831_vm12, %v884_v11, %v888_v48  ;;  %v1223_v7 = vsel %vm1165_vm14, %v1218_v63, %v1222_v53  ;;  %v3541_v41 = vmul.f32 0.085629165, %v759_v57 }
  0xb1   : > { %v957_v8 = vadd.f32 %v889_v19, %v589_v36  ;;  %v3543_v47 = vmul.f32 0.2426676, %v1093_v40  ;;  %v689_v34 = vrot.slane %v3536_v60, 4  ;;  %v1023_v15 = vrot.slane %v3536_v60, 2  ;;  %v1331_v40 = vpop.permute.xlu0 %1330 }
  0xb2   : > { %v1290_v18 = vadd.f32 %v1221_v49, %v956_v50  ;;  %v890_v3 = vrot.slane %v3541_v41, 6  ;;  %vm345_vm3 = vcmp.ge.s32.totalorder %v327_v61, 0  ;;  %vm363_vm5 = vcmp.lt.s32.totalorder %v327_v61, 512 }
  0xb3   : > { %v1291_v2 = vadd.f32 %v1223_v7, %v957_v8  ;;  %v1224_v9 = vrot.slane %v3543_v47, 7  ;;  %v690_v11 = vsel %vm628_vm4, %v685_v10, %v689_v34  ;;  %v1024_v63 = vsel %vm962_vm7, %v1019_v16, %v1023_v15  ;;  %vm381_vm6 = vmand %vm345_vm3, %vm363_vm5 }
  0xb4   : > { %1380 = vrot.lane.b32.xlu0 %v1290_v18, %s2680_s28  ;;  %v891_v58 = vsel %vm831_vm12, %v886_v28, %v890_v3  ;;  %v760_v12 = vadd.f32 %v3488_v56, %v690_v11  ;;  %v1094_v23 = vadd.f32 %v3488_v56, %v1024_v63  ;;  %v416_v36 = vunpack.c.0.s8 %v285_v20 }
  0xb5   : > { %1382 = vrot.lane.b32.xlu1 %v1291_v2, %s2680_s28  ;;  %v958_v45 = vadd.f32 %v891_v58, %v590_v13  ;;  %v1225_v24 = vsel %vm1165_vm14, %v1220_v59, %v1224_v9  ;;  %v417_v44 = vunpack.c.1.s8 %v285_v20  ;;  %v591_v33 = vmul.f32 0.34340647, %v3488_v56  ;;  %v1333_v56 = vpop.permute.xlu1 %1332  ;;  %v1337_v18 = vpop.permute.xlu0 %1336 }
  0xb6   : > { %v794_v21 = vmul.f32 0.085629165, %v760_v12  ;;  %v1128_v30 = vmul.f32 0.2426676, %v1094_v23  ;;  %v452_v4 = vand.u32 255, %v416_v36  ;;  %vm1955_vm8 = vcmask 1031168  }
  0xb7   : > { %v1292_v55 = vadd.f32 %v1225_v24, %v958_v45  ;;  %v453_v10 = vand.u32 255, %v417_v44  ;;  %v593_v61 = vmul.f32 0.34340647, %v3536_v60  ;;  %vm2164_vm9 = vcmask 7168  }
  0xb8   : > { %v892_v16 = vrot.slane %v794_v21, 6  ;;  %v1226_v54 = vrot.slane %v1128_v30, 7  ;;  %v2576_v26 = vcvt.s32.f32 %v452_v4  ;;  %vm2374_vm10 = vcmask 584706  }
  0xb9   : > { %1384 = vrot.lane.b32.xlu0 %v1292_v55, %s2680_s28  ;;  %v2578_v39 = vcvt.s32.f32 %v453_v10  ;;  %v1335_v57 = vpop.permute.xlu1 %1334  ;;  %vm4166_vm11 = vmor %vm2374_vm10, %vm831_vm12 }
  0xba   : > { %v893_v31 = vsel %vm831_vm12, %v888_v48, %v892_v16  ;;  %v1227_v38 = vsel %vm1165_vm14, %v1222_v53, %v1226_v54  ;;  %v2577_v25 = vsel %vm381_vm6, %v2576_v26, 0.0  ;;  %v592_v48 = vmul.f32 0.34340647, %v3515_v37 }
  0xbb   : > { %v959_v14 = vadd.f32 %v893_v31, %v591_v33  ;;  %v691_v27 = vrot.slane %v2577_v25, 4  ;;  %v1025_v0 = vrot.slane %v2577_v25, 2  ;;  %v2579_v51 = vsel %vm381_vm6, %v2578_v39, 0.0  ;;  %v1341_v63 = vpop.permute.xlu0 %1340 }
  0xbc   : > { %v693_v52 = vrot.slane %v2579_v51, 4  ;;  %v1027_v29 = vrot.slane %v2579_v51, 2 }
  0xbd   : > { %v1293_v1 = vadd.f32 %v1227_v38, %v959_v14  ;;  %v692_v43 = vsel %vm628_vm4, %v687_v62, %v691_v27  ;;  %v1026_v5 = vsel %vm962_vm7, %v1021_v22, %v1025_v0 }
  0xbe   : > { %v761_v32 = vadd.f32 %v3515_v37, %v692_v43  ;;  %v1095_v13 = vadd.f32 %v3515_v37, %v1026_v5  ;;  %v694_v42 = vsel %vm628_vm4, %v689_v34, %v693_v52  ;;  %v1028_v28 = vsel %vm962_vm7, %v1023_v15, %v1027_v29  ;;  %v1339_v37 = vpop.permute.xlu1 %1338 }
  0xbf   : > { %1386 = vrot.lane.b32.xlu1 %v1293_v1, %s2680_s28  ;;  %v762_v59 = vadd.f32 %v3536_v60, %v694_v42  ;;  %v1096_v17 = vadd.f32 %v3536_v60, %v1028_v28  ;;  %vm1392_vm4 = vcmask 15360   ;;  %vm1457_vm7 = vcmask 605184  }
  0xc0   : > { %v795_v6 = vmul.f32 0.085629165, %v761_v32  ;;  %v1129_v62 = vmul.f32 0.2426676, %v1095_v13  ;;  %v1393_v60 = vsel %vm1392_vm4, %v1329_v35, %v1331_v40  ;;  %v3594_v58 = vsel %vm1392_vm4, 0.0, %v1333_v56 }
  0xc1   : > { %v796_v53 = vmul.f32 0.085629165, %v762_v59  ;;  %v1130_v22 = vmul.f32 0.2426676, %v1096_v17  ;;  %v1394_v12 = vsel %vm1392_vm4, %v1333_v56, %v1335_v57  ;;  %v1395_v23 = vsel %vm1392_vm4, %v1337_v18, %v1339_v37 }
  0xc2   : > { %v894_v46 = vrot.slane %v795_v6, 6  ;;  %v1228_v49 = vrot.slane %v1129_v62, 7  ;;  %v1343_v11 = vpop.permute.xlu1 %1342  ;;  %v3601_v36 = vsel %vm1457_vm7, %v1394_v12, 0.0  ;;  %v3606_v24 = vsel %vm1392_vm4, 0.0, %v1337_v18 }
  0xc3   : > { %v896_v50 = vrot.slane %v796_v53, 6  ;;  %v1230_v19 = vrot.slane %v1130_v22, 7  ;;  %v3611_v44 = vsel %vm1457_vm7, %v1395_v23, 0.0  ;;  %v1396_v30 = vsel %vm1392_vm4, %v1341_v63, %v1343_v11 }
  0xc4   : > { %v895_v7 = vsel %vm831_vm12, %v890_v3, %v894_v46  ;;  %v1229_v41 = vsel %vm1165_vm14, %v1224_v9, %v1228_v49  ;;  %v3586_v3 = vsel %vm1392_vm4, 0.0, %v1329_v35  ;;  %v3589_v9 = vsel %vm1457_vm7, %v1393_v60, 0.0  ;;  %v1345_v21 = vpop.permute.xlu0 %1344 }
  0xc5   : > { %v960_v20 = vadd.f32 %v895_v7, %v592_v48  ;;  %v897_v8 = vsel %vm831_vm12, %v892_v16, %v896_v50  ;;  %v1231_v47 = vsel %vm1165_vm14, %v1226_v54, %v1230_v19  ;;  %v3617_v4 = vsel %vm1392_vm4, 0.0, %v1341_v63 }
  0xc6   : > { %v961_v34 = vadd.f32 %v897_v8, %v593_v61  ;;  %v1347_v45 = vpop.permute.xlu1 %1346  ;;  %v3622_v55 = vsel %vm1457_vm7, %v1396_v30, 0.0  ;;  %v3628_v54 = vsel %vm1392_vm4, 0.0, %v1345_v21  ;;  %vm1602_vm14 = vcmask 1014784  }
  0xc7   : > { %v1294_v15 = vadd.f32 %v1229_v41, %v960_v20  ;;  %v1397_v10 = vsel %vm1392_vm4, %v1345_v21, %v1347_v45 }
  0xc8   : > { %v1295_v2 = vadd.f32 %v1231_v47, %v961_v34  ;;  %v3633_v26 = vsel %vm1457_vm7, %v1397_v10, 0.0 }
  0xc9   : > { %1388 = vrot.lane.b32.xlu0 %v1294_v15, %s2680_s28 }
  0xca   : > { %1390 = vrot.lane.b32.xlu1 %v1295_v2, %s2680_s28 }
  0xcd   : > { %1538 = vrot.lane.b32.xlu0 %v3586_v3, %s2681_s8 }
  0xce   : > { %1540 = vrot.lane.b32.xlu1 %v3589_v9, %s2681_s8 }
  0xd1   : > { %1542 = vrot.lane.b32.xlu0 %v3594_v58, %s2681_s8 }
  0xd2   : > { %1544 = vrot.lane.b32.xlu1 %v3601_v36, %s2681_s8  ;;  %v1349_v16 = vpop.permute.xlu0 %1348 }
  0xd3   : > { %v1351_v33 = vpop.permute.xlu1 %1350  ;;  %v3639_v38 = vsel %vm1392_vm4, 0.0, %v1349_v16 }
  0xd4   : > { %v1398_v39 = vsel %vm1392_vm4, %v1349_v16, %v1351_v33 }
  0xd5   : > { %1546 = vrot.lane.b32.xlu0 %v3606_v24, %s2681_s8  ;;  %v3644_v25 = vsel %vm1457_vm7, %v1398_v39, 0.0 }
  0xd6   : > { %1548 = vrot.lane.b32.xlu1 %v3611_v44, %s2681_s8 }
  0xd7   : > { %v1353_v14 = vpop.permute.xlu0 %1352 }
  0xd8   : > { %v3650_v0 = vsel %vm1392_vm4, 0.0, %v1353_v14 }
  0xd9   : > { %1550 = vrot.lane.b32.xlu0 %v3617_v4, %s2681_s8 }
  0xda   : > { %1552 = vrot.lane.b32.xlu1 %v3622_v55, %s2681_s8 }
  0xdd   : > { %1554 = vrot.lane.b32.xlu0 %v3628_v54, %s2681_s8  ;;  %v1355_v31 = vpop.permute.xlu1 %1354 }
  0xde   : > { %1556 = vrot.lane.b32.xlu1 %v3633_v26, %s2681_s8  ;;  %v1399_v27 = vsel %vm1392_vm4, %v1353_v14, %v1355_v31 }
  0xdf   : > { %v3655_v51 = vsel %vm1457_vm7, %v1399_v27, 0.0 }
  0xe1   : > { %1558 = vrot.lane.b32.xlu0 %v3639_v38, %s2681_s8 }
  0xe2   : > { %1560 = vrot.lane.b32.xlu1 %v3644_v25, %s2681_s8 }
  0xe5   : > { %1562 = vrot.lane.b32.xlu0 %v3650_v0, %s2681_s8 }
  0xe6   : > { %1564 = vrot.lane.b32.xlu1 %v3655_v51, %s2681_s8 }
  0xe7   : > { %v1357_v56 = vpop.permute.xlu0 %1356 }
  0xe8   : > { %v3662_v35 = vsel %vm1392_vm4, 0.0, %v1357_v56  ;;  %v1359_v52 = vpop.permute.xlu1 %1358 }
  0xe9   : > { %1566 = vrot.lane.b32.xlu0 %v3662_v35, %s2681_s8  ;;  %v1400_v29 = vsel %vm1392_vm4, %v1357_v56, %v1359_v52 }
  0xea   : > { %v3668_v1 = vsel %vm1457_vm7, %v1400_v29, 0.0 }
  0xeb   : > { %1568 = vrot.lane.b32.xlu1 %v3668_v1, %s2681_s8 }
  0xec   : > { %v1361_v43 = vpop.permute.xlu0 %1360 }
  0xed   : > { %v3673_v5 = vsel %vm1392_vm4, 0.0, %v1361_v43 }
  0xee   : > { %1570 = vrot.lane.b32.xlu0 %v3673_v5, %s2681_s8 }
  0xf2   : > { %v1363_v32 = vpop.permute.xlu1 %1362 }
  0xf3   : > { %v1401_v13 = vsel %vm1392_vm4, %v1361_v43, %v1363_v32 }
  0xf4   : > { %v3679_v42 = vsel %vm1457_vm7, %v1401_v13, 0.0 }
  0xf5   : > { %1572 = vrot.lane.b32.xlu1 %v3679_v42, %s2681_s8 }
  0xfc   : > { %v1365_v28 = vpop.permute.xlu0 %1364 }
  0xfd   : > { %v3684_v59 = vsel %vm1392_vm4, 0.0, %v1365_v28  ;;  %v1367_v17 = vpop.permute.xlu1 %1366 }
  0xfe   : > { %1574 = vrot.lane.b32.xlu0 %v3684_v59, %s2681_s8  ;;  %v1402_v6 = vsel %vm1392_vm4, %v1365_v28, %v1367_v17 }
  0xff   : > { %v3690_v62 = vsel %vm1457_vm7, %v1402_v6, 0.0 }
 0x100   : > { %1576 = vrot.lane.b32.xlu1 %v3690_v62, %s2681_s8 }
 0x101   : > { %v1369_v48 = vpop.permute.xlu0 %1368 }
 0x102   : > { %v3695_v53 = vsel %vm1392_vm4, 0.0, %v1369_v48 }
 0x103   : > { %1578 = vrot.lane.b32.xlu0 %v3695_v53, %s2681_s8 }
 0x107   : > { %v1371_v22 = vpop.permute.xlu1 %1370 }
 0x108   : > { %v1403_v57 = vsel %vm1392_vm4, %v1369_v48, %v1371_v22 }
 0x109   : > { %v3701_v40 = vsel %vm1457_vm7, %v1403_v57, 0.0 }
 0x10a   : > { %1580 = vrot.lane.b32.xlu1 %v3701_v40, %s2681_s8 }
 0x111   : > { %v1373_v46 = vpop.permute.xlu0 %1372 }
 0x112   : > { %v3706_v49 = vsel %vm1392_vm4, 0.0, %v1373_v46  ;;  %v1375_v61 = vpop.permute.xlu1 %1374 }
 0x113   : > { %1582 = vrot.lane.b32.xlu0 %v3706_v49, %s2681_s8  ;;  %v1404_v50 = vsel %vm1392_vm4, %v1373_v46, %v1375_v61 }
 0x114   : > { %v3712_v19 = vsel %vm1457_vm7, %v1404_v50, 0.0 }
 0x115   : > { %1584 = vrot.lane.b32.xlu1 %v3712_v19, %s2681_s8 }
 0x116   : > { %v1377_v7 = vpop.permute.xlu0 %1376 }
 0x117   : > { %v3717_v41 = vsel %vm1392_vm4, 0.0, %v1377_v7 }
 0x118   : > { %1586 = vrot.lane.b32.xlu0 %v3717_v41, %s2681_s8 }
 0x11c   : > { %v1379_v20 = vpop.permute.xlu1 %1378 }
 0x11d   : > { %v1405_v8 = vsel %vm1392_vm4, %v1377_v7, %v1379_v20 }
 0x11e   : > { %v3723_v47 = vsel %vm1457_vm7, %v1405_v8, 0.0 }
 0x11f   : > { %4284 = vst [vmem:[#allocation2_spill] sm:$0xff] %v3723_v47  ;;  %1588 = vrot.lane.b32.xlu1 %v3723_v47, %s2681_s8 }
 0x126   : > { %v1381_v37 = vpop.permute.xlu0 %1380 }
 0x127   : > { %v3728_v34 = vsel %vm1392_vm4, 0.0, %v1381_v37  ;;  %v1383_v15 = vpop.permute.xlu1 %1382 }
 0x128   : > { %4285 = vst [vmem:[#allocation3_spill] sm:$0xff] %v3728_v34  ;;  %1590 = vrot.lane.b32.xlu0 %v3728_v34, %s2681_s8  ;;  %v1406_v18 = vsel %vm1392_vm4, %v1381_v37, %v1383_v15 }
 0x129   : > { %v3734_v2 = vsel %vm1457_vm7, %v1406_v18, 0.0 }
 0x12a   : > { %4286 = vst [vmem:[#allocation4_spill] sm:$0xff] %v3734_v2  ;;  %1592 = vrot.lane.b32.xlu1 %v3734_v2, %s2681_s8 }
 0x12b   : > { %v1385_v60 = vpop.permute.xlu0 %1384 }
 0x12c   : > { %v3739_v11 = vsel %vm1392_vm4, 0.0, %v1385_v60 }
 0x12d   : > { %4287 = vst [vmem:[#allocation5_spill] sm:$0xff] %v3739_v11  ;;  %1594 = vrot.lane.b32.xlu0 %v3739_v11, %s2681_s8 }
 0x131   : > { %v1387_v63 = vpop.permute.xlu1 %1386  ;;  %1891 = vrot.lane.b32.xlu0 %v3586_v3, %s2682_s9 }
 0x132   : > { %v1407_v12 = vsel %vm1392_vm4, %v1385_v60, %v1387_v63 }
 0x133   : > { %v3747_v23 = vsel %vm1457_vm7, %v1407_v12, 0.0 }
 0x134   : > { %4288 = vst [vmem:[#allocation6_spill] sm:$0xff] %v3747_v23  ;;  %1596 = vrot.lane.b32.xlu1 %v3747_v23, %s2681_s8 }
 0x135   : > { %1895 = vrot.lane.b32.xlu0 %v3594_v58, %s2682_s9 }
 0x138   : > { %1893 = vrot.lane.b32.xlu1 %v3589_v9, %s2682_s9 }
 0x139   : > { %1899 = vrot.lane.b32.xlu0 %v3606_v24, %s2682_s9 }
 0x13b   : > { %v1389_v45 = vpop.permute.xlu0 %1388 }
 0x13c   : > { %1897 = vrot.lane.b32.xlu1 %v3601_v36, %s2682_s9  ;;  %v3770_v21 = vsel %vm1392_vm4, 0.0, %v1389_v45  ;;  %v1391_v30 = vpop.permute.xlu1 %1390 }
 0x13d   : > { %1903 = vrot.lane.b32.xlu0 %v3617_v4, %s2682_s9  ;;  %4289 = vst [vmem:[#allocation7_spill] sm:$0xff] %v3770_v21  ;;  %v1408_v33 = vsel %vm1392_vm4, %v1389_v45, %v1391_v30 }
 0x13e   : > { %v3780_v16 = vsel %vm1457_vm7, %v1408_v33, 0.0 }
 0x13f   : > { %v1539_v10 = vpop.permute.xlu0 %1538  ;;  %4290 = vst [vmem:[#allocation8_spill] sm:$0xff] %v3780_v16 }
 0x140   : > { %1901 = vrot.lane.b32.xlu1 %v3611_v44, %s2682_s9  ;;  %v1541_v39 = vpop.permute.xlu1 %1540 }
 0x141   : > { %1907 = vrot.lane.b32.xlu0 %v3628_v54, %s2682_s9  ;;  %v1603_v28 = vsel %vm1602_vm14, %v1539_v10, %v1541_v39  ;;  %v1652_v7 = vadd.f32 %v1541_v39, %v3589_v9 }
 0x142   : > { %v1651_v6 = vadd.f32 %v1603_v28, %v3586_v3 }
 0x143   : > { %v1543_v31 = vpop.permute.xlu0 %1542  ;;  %v1684_v63 = vmul.f32 0.085629165, %v1652_v7 }
 0x144   : > { %1905 = vrot.lane.b32.xlu1 %v3622_v55, %s2682_s9  ;;  %v1545_v14 = vpop.permute.xlu1 %1544  ;;  %v1683_v46 = vmul.f32 0.085629165, %v1651_v6 }
 0x145   : > { %1911 = vrot.lane.b32.xlu0 %v3639_v38, %s2682_s9  ;;  %v1604_v48 = vsel %vm1602_vm14, %v1543_v31, %v1545_v14  ;;  %v1654_v60 = vadd.f32 %v1545_v14, %v3601_v36 }
 0x146   : > { %v1653_v57 = vadd.f32 %v1604_v48, %v3594_v58 }
 0x147   : > { %v1547_v27 = vpop.permute.xlu0 %1546  ;;  %v1686_v10 = vmul.f32 0.085629165, %v1654_v60 }
 0x148   : > { %1909 = vrot.lane.b32.xlu1 %v3633_v26, %s2682_s9  ;;  %v1549_v56 = vpop.permute.xlu1 %1548  ;;  %v1685_v8 = vmul.f32 0.085629165, %v1653_v57 }
 0x149   : > { %1598 = vrot.lane.b32.xlu0 %v3770_v21, %s2681_s8  ;;  %v1605_v50 = vsel %vm1602_vm14, %v1547_v27, %v1549_v56  ;;  %v1656_v39 = vadd.f32 %v1549_v56, %v3611_v44 }
 0x14a   : > { %v1655_v37 = vadd.f32 %v1605_v50, %v3606_v24 }
 0x14b   : > { %v1551_v52 = vpop.permute.xlu0 %1550  ;;  %v1688_v28 = vmul.f32 0.085629165, %v1656_v39 }
 0x14c   : > { %1913 = vrot.lane.b32.xlu1 %v3644_v25, %s2682_s9  ;;  %v1553_v29 = vpop.permute.xlu1 %1552  ;;  %v1687_v12 = vmul.f32 0.085629165, %v1655_v37 }
 0x14d   : > { %1915 = vrot.lane.b32.xlu0 %v3650_v0, %s2682_s9  ;;  %v1606_v15 = vsel %vm1602_vm14, %v1551_v52, %v1553_v29  ;;  %v1658_v6 = vadd.f32 %v1553_v29, %v3622_v55 }
 0x14e   : > { %v1657_v45 = vadd.f32 %v1606_v15, %v3617_v4 }
 0x14f   : > { %v1555_v43 = vpop.permute.xlu0 %1554  ;;  %v1690_v50 = vmul.f32 0.085629165, %v1658_v6 }
 0x150   : > { %1600 = vrot.lane.b32.xlu1 %v3780_v16, %s2681_s8  ;;  %v1557_v32 = vpop.permute.xlu1 %1556  ;;  %v1689_v31 = vmul.f32 0.085629165, %v1657_v45 }
 0x151   : > { %1919 = vrot.lane.b32.xlu0 %v3662_v35, %s2682_s9  ;;  %v1607_v30 = vsel %vm1602_vm14, %v1555_v43, %v1557_v32  ;;  %v1660_v7 = vadd.f32 %v1557_v32, %v3633_v26 }
 0x152   : > { %v1659_v27 = vadd.f32 %v1607_v30, %v3628_v54 }
 0x153   : > { %v1559_v13 = vpop.permute.xlu0 %1558  ;;  %v1692_v15 = vmul.f32 0.085629165, %v1660_v7 }
 0x154   : > { %1917 = vrot.lane.b32.xlu1 %v3655_v51, %s2682_s9  ;;  %v1561_v17 = vpop.permute.xlu1 %1560  ;;  %v1691_v48 = vmul.f32 0.085629165, %v1659_v27 }
 0x155   : > { %1923 = vrot.lane.b32.xlu0 %v3673_v5, %s2682_s9  ;;  %v1608_v14 = vsel %vm1602_vm14, %v1559_v13, %v1561_v17  ;;  %v1662_v60 = vadd.f32 %v1561_v17, %v3644_v25 }
 0x156   : > { %v1661_v57 = vadd.f32 %v1608_v14, %v3639_v38 }
 0x157   : > { %v1563_v22 = vpop.permute.xlu0 %1562  ;;  %v1694_v45 = vmul.f32 0.085629165, %v1662_v60 }
 0x158   : > { %1921 = vrot.lane.b32.xlu1 %v3668_v1, %s2682_s9  ;;  %v1565_v61 = vpop.permute.xlu1 %1564  ;;  %v1693_v13 = vmul.f32 0.085629165, %v1661_v57 }
 0x159   : > { %1927 = vrot.lane.b32.xlu0 %v3684_v59, %s2682_s9  ;;  %v1609_v56 = vsel %vm1602_vm14, %v1563_v22, %v1565_v61  ;;  %v1664_v30 = vadd.f32 %v1565_v61, %v3655_v51 }
 0x15b   : > { %v1567_v20 = vpop.permute.xlu0 %1566  ;;  %v1696_v27 = vmul.f32 0.085629165, %v1664_v30 }
 0x15c   : > { %1925 = vrot.lane.b32.xlu1 %v3679_v42, %s2682_s9 }
 0x15d   : > { %1931 = vrot.lane.b32.xlu0 %v3695_v53, %s2682_s9  ;;  %v1569_v18 = vpop.permute.xlu1 %1568 }
 0x15e   : > { %v1610_v29 = vsel %vm1602_vm14, %v1567_v20, %v1569_v18  ;;  %v1666_v14 = vadd.f32 %v1569_v18, %v3668_v1 }
 0x160   : > { %1929 = vrot.lane.b32.xlu1 %v3690_v62, %s2682_s9  ;;  %v1571_v33 = vpop.permute.xlu0 %1570 }
 0x161   : > { %1935 = vrot.lane.b32.xlu0 %v3706_v49, %s2682_s9 }
 0x164   : > { %1933 = vrot.lane.b32.xlu1 %v3701_v40, %s2682_s9 }
 0x165   : > { %1939 = vrot.lane.b32.xlu0 %v3717_v41, %s2682_s9 }
 0x167   : > { %v1573_v52 = vpop.permute.xlu1 %1572 }
 0x168   : > { %1937 = vrot.lane.b32.xlu1 %v3712_v19, %s2682_s9  ;;  %v1611_v32 = vsel %vm1602_vm14, %v1571_v33, %v1573_v52  ;;  %v1668_v57 = vadd.f32 %v1573_v52, %v3679_v42 }
 0x169   : > { %1943 = vrot.lane.b32.xlu0 %v3728_v34, %s2682_s9  ;;  %v1667_v39 = vadd.f32 %v1611_v32, %v3673_v5 }
 0x16a   : > { %v1700_v7 = vmul.f32 0.085629165, %v1668_v57 }
 0x16b   : > { %v1699_v33 = vmul.f32 0.085629165, %v1667_v39 }
 0x16c   : > { %1941 = vrot.lane.b32.xlu1 %v3723_v47, %s2682_s9 }
 0x16d   : > { %1947 = vrot.lane.b32.xlu0 %v3739_v11, %s2682_s9 }
 0x170   : > { %1945 = vrot.lane.b32.xlu1 %v3734_v2, %s2682_s9  ;;  %v1575_v43 = vpop.permute.xlu0 %1574 }
 0x171   : > { %1951 = vrot.lane.b32.xlu0 %v3770_v21, %s2682_s9 }
 0x174   : > { %1949 = vrot.lane.b32.xlu1 %v3747_v23, %s2682_s9 }
 0x175   : > { %1747 = vrot.lane.b32.xlu0 %v1683_v46, %s2680_s28  ;;  %v1577_v46 = vpop.permute.xlu1 %1576  ;;  %v1579_v37 = vpop.permute.xlu0 %1578 }
 0x176   : > { %v1612_v17 = vsel %vm1602_vm14, %v1575_v43, %v1577_v46 }
 0x178   : > { %1953 = vrot.lane.b32.xlu1 %v3780_v16, %s2682_s9 }
 0x179   : > { %1751 = vrot.lane.b32.xlu0 %v1685_v8, %s2680_s28  ;;  %v1663_v8 = vadd.f32 %v1609_v56, %v3650_v0 }
 0x17b   : > { %v1695_v22 = vmul.f32 0.085629165, %v1663_v8 }
 0x17c   : > { %1749 = vrot.lane.b32.xlu1 %v1684_v63, %s2680_s28  ;;  %v1665_v63 = vadd.f32 %v1610_v29, %v3662_v35 }
 0x17d   : > { %1755 = vrot.lane.b32.xlu0 %v1687_v12, %s2680_s28  ;;  %v1581_v12 = vpop.permute.xlu1 %1580 }
 0x17e   : > { %v1613_v61 = vsel %vm1602_vm14, %v1579_v37, %v1581_v12 }
 0x17f   : > { %v1671_v56 = vadd.f32 %v1613_v61, %v3695_v53 }
 0x180   : > { %1753 = vrot.lane.b32.xlu1 %v1686_v10, %s2680_s28  ;;  %v1697_v10 = vmul.f32 0.085629165, %v1665_v63 }
 0x181   : > { %1759 = vrot.lane.b32.xlu0 %v1689_v31, %s2680_s28  ;;  %v1703_v29 = vmul.f32 0.085629165, %v1671_v56 }
 0x184   : > { %1757 = vrot.lane.b32.xlu1 %v1688_v28, %s2680_s28  ;;  %v1669_v28 = vadd.f32 %v1612_v17, %v3684_v59 }
 0x185   : > { %1763 = vrot.lane.b32.xlu0 %v1691_v48, %s2680_s28  ;;  %v1583_v20 = vpop.permute.xlu0 %1582  ;;  %v1698_v48 = vmul.f32 0.085629165, %v1666_v14 }
 0x186   : > { %v1701_v43 = vmul.f32 0.085629165, %v1669_v28 }
 0x187   : > { %v1585_v31 = vpop.permute.xlu1 %1584 }
 0x188   : > { %1761 = vrot.lane.b32.xlu1 %v1690_v50, %s2680_s28  ;;  %v1614_v18 = vsel %vm1602_vm14, %v1583_v20, %v1585_v31  ;;  %v1674_v20 = vadd.f32 %v1585_v31, %v3712_v19 }
 0x189   : > { %1767 = vrot.lane.b32.xlu0 %v1693_v13, %s2680_s28  ;;  %v1670_v13 = vadd.f32 %v1577_v46, %v3690_v62  ;;  %v1673_v37 = vadd.f32 %v1614_v18, %v3706_v49 }
 0x18a   : > { %v1587_v6 = vpop.permute.xlu0 %1586 }
 0x18b   : > { %v1702_v60 = vmul.f32 0.085629165, %v1670_v13  ;;  %v1705_v63 = vmul.f32 0.085629165, %v1673_v37 }
 0x18c   : > { %1765 = vrot.lane.b32.xlu1 %v1692_v15, %s2680_s28 }
 0x18d   : > { %1771 = vrot.lane.b32.xlu0 %v1695_v22, %s2680_s28  ;;  %v1672_v22 = vadd.f32 %v1581_v12, %v3701_v40  ;;  %v1706_v12 = vmul.f32 0.085629165, %v1674_v20 }
 0x18f   : > { %v1704_v30 = vmul.f32 0.085629165, %v1672_v22 }
 0x190   : > { %1769 = vrot.lane.b32.xlu1 %v1694_v45, %s2680_s28 }
 0x191   : > { %1775 = vrot.lane.b32.xlu0 %v1697_v10, %s2680_s28  ;;  %v1589_v50 = vpop.permute.xlu1 %1588 }
 0x192   : > { %v1615_v52 = vsel %vm1602_vm14, %v1587_v6, %v1589_v50 }
 0x193   : > { %v1675_v32 = vadd.f32 %v1615_v52, %v3717_v41 }
 0x194   : > { %1773 = vrot.lane.b32.xlu1 %v1696_v27, %s2680_s28  ;;  %v1676_v27 = vadd.f32 %v1589_v50, %v3723_v47 }
 0x195   : > { %1779 = vrot.lane.b32.xlu0 %v1699_v33, %s2680_s28  ;;  %v1707_v10 = vmul.f32 0.085629165, %v1675_v32 }
 0x196   : > { %v1708_v31 = vmul.f32 0.085629165, %v1676_v27 }
 0x198   : > { %1777 = vrot.lane.b32.xlu1 %v1698_v48, %s2680_s28 }
 0x199   : > { %1783 = vrot.lane.b32.xlu0 %v1701_v43, %s2680_s28 }
 0x19a   : > { %v1591_v8 = vpop.permute.xlu0 %1590 }
 0x19c   : > { %1781 = vrot.lane.b32.xlu1 %v1700_v7, %s2680_s28  ;;  %v1593_v15 = vpop.permute.xlu1 %1592 }
 0x19d   : > { %1787 = vrot.lane.b32.xlu0 %v1703_v29, %s2680_s28  ;;  %v1616_v46 = vsel %vm1602_vm14, %v1591_v8, %v1593_v15  ;;  %v1678_v48 = vadd.f32 %v1593_v15, %v3734_v2 }
 0x19e   : > { %v1677_v39 = vadd.f32 %v1616_v46, %v3728_v34 }
 0x19f   : > { %v1595_v45 = vpop.permute.xlu0 %1594  ;;  %v1710_v7 = vmul.f32 0.085629165, %v1678_v48 }
 0x1a0   : > { %1785 = vrot.lane.b32.xlu1 %v1702_v60, %s2680_s28  ;;  %v1709_v33 = vmul.f32 0.085629165, %v1677_v39 }
 0x1a1   : > { %1791 = vrot.lane.b32.xlu0 %v1705_v63, %s2680_s28 }
 0x1a3   : > { %v1892_v17 = vpop.permute.xlu0 %1891 }
 0x1a4   : > { %1789 = vrot.lane.b32.xlu1 %v1704_v30, %s2680_s28 }
 0x1a5   : > { %1795 = vrot.lane.b32.xlu0 %v1707_v10, %s2680_s28 }
 0x1a6   : > { %v1597_v14 = vpop.permute.xlu1 %1596 }
 0x1a7   : > { %v1617_v28 = vsel %vm1602_vm14, %v1595_v45, %v1597_v14  ;;  %v1896_v61 = vpop.permute.xlu0 %1895  ;;  %v1680_v13 = vadd.f32 %v1597_v14, %v3747_v23 }
 0x1a8   : > { %v1679_v6 = vadd.f32 %v1617_v28, %v3739_v11  ;;  %1793 = vrot.lane.b32.xlu1 %v1706_v12, %s2680_s28 }
 0x1a9   : > { %1799 = vrot.lane.b32.xlu0 %v1709_v33, %s2680_s28  ;;  %v1712_v60 = vmul.f32 0.085629165, %v1680_v13 }
 0x1aa   : > { %v1894_v57 = vpop.permute.xlu1 %1893  ;;  %v1711_v43 = vmul.f32 0.085629165, %v1679_v6 }
 0x1ab   : > { %v1956_v56 = vsel %vm1955_vm8, %v1892_v17, %v1894_v57  ;;  %v1900_v50 = vpop.permute.xlu0 %1899  ;;  %v2005_v22 = vadd.f32 %v1894_v57, %v3589_v9 }
 0x1ac   : > { %v2004_v18 = vadd.f32 %v1956_v56, %v3586_v3  ;;  %1797 = vrot.lane.b32.xlu1 %v1708_v31, %s2680_s28 }
 0x1ad   : > { %1803 = vrot.lane.b32.xlu0 %v1711_v43, %s2680_s28  ;;  %v2037_v20 = vmul.f32 0.2426676, %v2005_v22 }
 0x1ae   : > { %v1898_v8 = vpop.permute.xlu1 %1897  ;;  %v2036_v29 = vmul.f32 0.2426676, %v2004_v18 }
 0x1af   : > { %v1957_v37 = vsel %vm1955_vm8, %v1896_v61, %v1898_v8  ;;  %v1904_v52 = vpop.permute.xlu0 %1903  ;;  %v2007_v10 = vadd.f32 %v1898_v8, %v3601_v36 }
 0x1b0   : > { %v2006_v15 = vadd.f32 %v1957_v37, %v3594_v58  ;;  %1801 = vrot.lane.b32.xlu1 %v1710_v7, %s2680_s28 }
 0x1b1   : > { %2100 = vrot.lane.b32.xlu0 %v2036_v29, %s2683_s10  ;;  %v2039_v33 = vmul.f32 0.2426676, %v2007_v10 }
 0x1b2   : > { %v1902_v63 = vpop.permute.xlu1 %1901  ;;  %v2038_v32 = vmul.f32 0.2426676, %v2006_v15 }
 0x1b3   : > { %v1958_v45 = vsel %vm1955_vm8, %v1900_v50, %v1902_v63  ;;  %v1908_v46 = vpop.permute.xlu0 %1907  ;;  %v2009_v28 = vadd.f32 %v1902_v63, %v3611_v44 }
 0x1b4   : > { %v2008_v30 = vadd.f32 %v1958_v45, %v3606_v24  ;;  %1805 = vrot.lane.b32.xlu1 %v1712_v60, %s2680_s28 }
 0x1b5   : > { %2104 = vrot.lane.b32.xlu0 %v2038_v32, %s2683_s10  ;;  %v2041_v48 = vmul.f32 0.2426676, %v2009_v28 }
 0x1b6   : > { %v1906_v39 = vpop.permute.xlu1 %1905  ;;  %v2040_v17 = vmul.f32 0.2426676, %v2008_v30 }
 0x1b7   : > { %v1959_v12 = vsel %vm1955_vm8, %v1904_v52, %v1906_v39  ;;  %v1912_v27 = vpop.permute.xlu0 %1911  ;;  %v2011_v57 = vadd.f32 %v1906_v39, %v3622_v55 }
 0x1b8   : > { %v2010_v14 = vadd.f32 %v1959_v12, %v3617_v4  ;;  %2102 = vrot.lane.b32.xlu1 %v2037_v20, %s2683_s10 }
 0x1b9   : > { %2108 = vrot.lane.b32.xlu0 %v2040_v17, %s2683_s10  ;;  %v2043_v50 = vmul.f32 0.2426676, %v2011_v57 }
 0x1ba   : > { %v1910_v61 = vpop.permute.xlu1 %1909  ;;  %v2042_v6 = vmul.f32 0.2426676, %v2010_v14 }
 0x1bb   : > { %v1599_v31 = vpop.permute.xlu0 %1598  ;;  %v1960_v7 = vsel %vm1955_vm8, %v1908_v46, %v1910_v61  ;;  %v2013_v60 = vadd.f32 %v1910_v61, %v3633_v26 }
 0x1bc   : > { %2106 = vrot.lane.b32.xlu1 %v2039_v33, %s2683_s10  ;;  %v2012_v15 = vadd.f32 %v1960_v7, %v3628_v54 }
 0x1bd   : > { %2112 = vrot.lane.b32.xlu0 %v2042_v6, %s2683_s10  ;;  %v2045_v30 = vmul.f32 0.2426676, %v2013_v60 }
 0x1be   : > { %v1914_v43 = vpop.permute.xlu1 %1913  ;;  %v2044_v46 = vmul.f32 0.2426676, %v2012_v15 }
 0x1bf   : > { %v1916_v56 = vpop.permute.xlu0 %1915  ;;  %v1961_v32 = vsel %vm1955_vm8, %v1912_v27, %v1914_v43  ;;  %v2015_v10 = vadd.f32 %v1914_v43, %v3644_v25 }
 0x1c0   : > { %2110 = vrot.lane.b32.xlu1 %v2041_v48, %s2683_s10  ;;  %v2014_v20 = vadd.f32 %v1961_v32, %v3639_v38 }
 0x1c1   : > { %v2047_v14 = vmul.f32 0.2426676, %v2015_v10 }
 0x1c2   : > { %v1601_v18 = vpop.permute.xlu1 %1600  ;;  %v2046_v27 = vmul.f32 0.2426676, %v2014_v20 }
 0x1c3   : > { %v1618_v13 = vsel %vm1602_vm14, %v1599_v31, %v1601_v18  ;;  %v1682_v8 = vadd.f32 %v1601_v18, %v3780_v16  ;;  %v1920_v29 = vpop.permute.xlu0 %1919 }
 0x1c4   : > { %v1681_v37 = vadd.f32 %v1618_v13, %v3770_v21  ;;  %2114 = vrot.lane.b32.xlu1 %v2043_v50, %s2683_s10 }
 0x1c5   : > { %v1714_v52 = vmul.f32 0.085629165, %v1682_v8 }
 0x1c6   : > { %v1713_v22 = vmul.f32 0.085629165, %v1681_v37  ;;  %v1918_v63 = vpop.permute.xlu1 %1917 }
 0x1c7   : > { %v1924_v45 = vpop.permute.xlu0 %1923  ;;  %v1962_v17 = vsel %vm1955_vm8, %v1916_v56, %v1918_v63  ;;  %v2017_v28 = vadd.f32 %v1918_v63, %v3655_v51 }
 0x1c8   : > { %1809 = vrot.lane.b32.xlu1 %v1714_v52, %s2680_s28  ;;  %1807 = vrot.lane.b32.xlu0 %v1713_v22, %s2680_s28  ;;  %v2016_v33 = vadd.f32 %v1962_v17, %v3650_v0 }
 0x1c9   : > { %v2049_v57 = vmul.f32 0.2426676, %v2017_v28 }
 0x1ca   : > { %v1922_v39 = vpop.permute.xlu1 %1921  ;;  %v2048_v48 = vmul.f32 0.2426676, %v2016_v33 }
 0x1cb   : > { %v1928_v12 = vpop.permute.xlu0 %1927  ;;  %v1963_v6 = vsel %vm1955_vm8, %v1920_v29, %v1922_v39  ;;  %v2019_v56 = vadd.f32 %v1922_v39, %v3668_v1 }
 0x1cc   : > { %2118 = vrot.lane.b32.xlu1 %v2045_v30, %s2683_s10  ;;  %2116 = vrot.lane.b32.xlu0 %v2044_v46, %s2683_s10  ;;  %v2018_v43 = vadd.f32 %v1963_v6, %v3662_v35 }
 0x1cd   : > { %v2051_v8 = vmul.f32 0.2426676, %v2019_v56 }
 0x1ce   : > { %v1926_v61 = vpop.permute.xlu1 %1925  ;;  %v2050_v13 = vmul.f32 0.2426676, %v2018_v43 }
 0x1cf   : > { %v1932_v31 = vpop.permute.xlu0 %1931  ;;  %v1964_v18 = vsel %vm1955_vm8, %v1924_v45, %v1926_v61  ;;  %v2021_v37 = vadd.f32 %v1926_v61, %v3679_v42 }
 0x1d0   : > { %2122 = vrot.lane.b32.xlu1 %v2047_v14, %s2683_s10  ;;  %2120 = vrot.lane.b32.xlu0 %v2046_v27, %s2683_s10  ;;  %v2020_v29 = vadd.f32 %v1964_v18, %v3673_v5 }
 0x1d1   : > { %v2053_v63 = vmul.f32 0.2426676, %v2021_v37 }
 0x1d2   : > { %v1930_v50 = vpop.permute.xlu1 %1929  ;;  %v2052_v22 = vmul.f32 0.2426676, %v2020_v29 }
 0x1d3   : > { %v1936_v7 = vpop.permute.xlu0 %1935  ;;  %v1965_v15 = vsel %vm1955_vm8, %v1928_v12, %v1930_v50  ;;  %v2023_v45 = vadd.f32 %v1930_v50, %v3690_v62 }
 0x1d4   : > { %2126 = vrot.lane.b32.xlu1 %v2049_v57, %s2683_s10  ;;  %2124 = vrot.lane.b32.xlu0 %v2048_v48, %s2683_s10  ;;  %v2022_v32 = vadd.f32 %v1965_v15, %v3684_v59 }
 0x1d5   : > { %v2055_v39 = vmul.f32 0.2426676, %v2023_v45 }
 0x1d6   : > { %v1934_v52 = vpop.permute.xlu1 %1933  ;;  %v2054_v10 = vmul.f32 0.2426676, %v2022_v32 }
 0x1d7   : > { %v1940_v60 = vpop.permute.xlu0 %1939  ;;  %v1966_v30 = vsel %vm1955_vm8, %v1932_v31, %v1934_v52  ;;  %v2025_v12 = vadd.f32 %v1934_v52, %v3701_v40 }
 0x1d8   : > { %2130 = vrot.lane.b32.xlu1 %v2051_v8, %s2683_s10  ;;  %2128 = vrot.lane.b32.xlu0 %v2050_v13, %s2683_s10  ;;  %v2024_v17 = vadd.f32 %v1966_v30, %v3695_v53 }
 0x1d9   : > { %v2057_v61 = vmul.f32 0.2426676, %v2025_v12 }
 0x1da   : > { %v1938_v46 = vpop.permute.xlu1 %1937  ;;  %v2056_v28 = vmul.f32 0.2426676, %v2024_v17 }
 0x1db   : > { %v1944_v20 = vpop.permute.xlu0 %1943  ;;  %v1967_v14 = vsel %vm1955_vm8, %v1936_v7, %v1938_v46  ;;  %v2027_v31 = vadd.f32 %v1938_v46, %v3712_v19 }
 0x1dc   : > { %2134 = vrot.lane.b32.xlu1 %v2053_v63, %s2683_s10  ;;  %2132 = vrot.lane.b32.xlu0 %v2052_v22, %s2683_s10  ;;  %v2026_v6 = vadd.f32 %v1967_v14, %v3706_v49 }
 0x1dd   : > { %v2059_v50 = vmul.f32 0.2426676, %v2027_v31 }
 0x1de   : > { %v1942_v27 = vpop.permute.xlu1 %1941  ;;  %v2058_v56 = vmul.f32 0.2426676, %v2026_v6 }
 0x1df   : > { %v1948_v33 = vpop.permute.xlu0 %1947  ;;  %v1968_v57 = vsel %vm1955_vm8, %v1940_v60, %v1942_v27  ;;  %v2029_v7 = vadd.f32 %v1942_v27, %v3723_v47 }
 0x1e0   : > { %2138 = vrot.lane.b32.xlu1 %v2055_v39, %s2683_s10  ;;  %2136 = vrot.lane.b32.xlu0 %v2054_v10, %s2683_s10  ;;  %v2028_v18 = vadd.f32 %v1968_v57, %v3717_v41 }
 0x1e1   : > { %v2061_v52 = vmul.f32 0.2426676, %v2029_v7 }
 0x1e2   : > { %v1946_v48 = vpop.permute.xlu1 %1945  ;;  %v2060_v37 = vmul.f32 0.2426676, %v2028_v18 }
 0x1e3   : > { %v1952_v43 = vpop.permute.xlu0 %1951  ;;  %v1969_v8 = vsel %vm1955_vm8, %v1944_v20, %v1946_v48  ;;  %v2031_v60 = vadd.f32 %v1946_v48, %v3734_v2  ;;  %v1475_v2 = vmul.f32 0.34340647, %v3589_v9 }
 0x1e4   : > { %2142 = vrot.lane.b32.xlu1 %v2057_v61, %s2683_s10  ;;  %2140 = vrot.lane.b32.xlu0 %v2056_v28, %s2683_s10  ;;  %v2030_v15 = vadd.f32 %v1969_v8, %v3728_v34 }
 0x1e5   : > { %v2063_v46 = vmul.f32 0.2426676, %v2031_v60 }
 0x1e6   : > { %v1950_v13 = vpop.permute.xlu1 %1949  ;;  %v2062_v45 = vmul.f32 0.2426676, %v2030_v15 }
 0x1e7   : > { %v1748_v29 = vpop.permute.xlu0 %1747  ;;  %v1970_v63 = vsel %vm1955_vm8, %v1948_v33, %v1950_v13  ;;  %v2033_v20 = vadd.f32 %v1950_v13, %v3747_v23 }
 0x1e8   : > { %2146 = vrot.lane.b32.xlu1 %v2059_v50, %s2683_s10  ;;  %2144 = vrot.lane.b32.xlu0 %v2058_v56, %s2683_s10  ;;  %v2032_v30 = vadd.f32 %v1970_v63, %v3739_v11 }
 0x1e9   : > { %v2065_v27 = vmul.f32 0.2426676, %v2033_v20 }
 0x1ea   : > { %v1954_v22 = vpop.permute.xlu1 %1953  ;;  %v2064_v12 = vmul.f32 0.2426676, %v2032_v30 }
 0x1eb   : > { %v1752_v32 = vpop.permute.xlu0 %1751  ;;  %v1971_v39 = vsel %vm1955_vm8, %v1952_v43, %v1954_v22  ;;  %v2035_v33 = vadd.f32 %v1954_v22, %v3780_v16 }
 0x1ec   : > { %2150 = vrot.lane.b32.xlu1 %v2061_v52, %s2683_s10  ;;  %2148 = vrot.lane.b32.xlu0 %v2060_v37, %s2683_s10  ;;  %v2034_v14 = vadd.f32 %v1971_v39, %v3770_v21  ;;  %v1476_v21 = vmul.f32 0.34340647, %v3594_v58  ;;  %v1477_v58 = vmul.f32 0.34340647, %v3601_v36 }
 0x1ed   : > { %v2067_v31 = vmul.f32 0.2426676, %v2035_v33 }
 0x1ee   : > { %v1750_v10 = vpop.permute.xlu1 %1749  ;;  %v2066_v6 = vmul.f32 0.2426676, %v2034_v14  ;;  %v1861_v34 = vadd.f32 %v1752_v32, %v1476_v21 }
 0x1ef   : > { %v3976_v17 = vpop.permute.xlu0 %1755  ;;  %v1811_v23 = vsel %vm1392_vm4, %v1748_v29, %v1750_v10 }
 0x1f0   : > { %2154 = vrot.lane.b32.xlu1 %v2063_v46, %s2683_s10  ;;  %2152 = vrot.lane.b32.xlu0 %v2062_v45, %s2683_s10  ;;  %v1860_v47 = vadd.f32 %v1811_v23, %v1475_v2 }
 0x1f2   : > { %v1754_v28 = vpop.permute.xlu1 %1753 }
 0x1f3   : > { %v3982_v61 = vpop.permute.xlu0 %1759 }
 0x1f4   : > { %2158 = vrot.lane.b32.xlu1 %v2065_v27, %s2683_s10  ;;  %2156 = vrot.lane.b32.xlu0 %v2064_v12, %s2683_s10 }
 0x1f6   : > { %v1758_v48 = vpop.permute.xlu1 %1757 }
 0x1f7   : > { %v3986_v57 = vpop.permute.xlu0 %1763 }
 0x1f8   : > { %2162 = vrot.lane.b32.xlu1 %v2067_v31, %s2683_s10  ;;  %2160 = vrot.lane.b32.xlu0 %v2066_v6, %s2683_s10  ;;  %v1474_v6 = vmul.f32 0.34340647, %v3586_v3 }
 0x1fa   : > { %v3990_v43 = vpop.permute.xlu1 %1761  ;;  %v1859_v31 = vadd.f32 %v1748_v29, %v1474_v6 }
 0x1fb   : > { %v3992_v56 = vpop.permute.xlu0 %1767 }
 0x1fe   : > { %v3994_v50 = vpop.permute.xlu1 %1765 }
 0x1ff   : > { %v3996_v18 = vpop.permute.xlu0 %1771 }
 0x202   : > { %v3998_v7 = vpop.permute.xlu1 %1769 }
 0x203   : > { %v4000_v13 = vpop.permute.xlu0 %1775 }
 0x206   : > { %v4002_v8 = vpop.permute.xlu1 %1773 }
 0x207   : > { %v4004_v37 = vpop.permute.xlu0 %1779 }
 0x20a   : > { %v4006_v52 = vpop.permute.xlu1 %1777 }
 0x20b   : > { %v4008_v15 = vpop.permute.xlu0 %1783 }
 0x20e   : > { %v4010_v60 = vpop.permute.xlu1 %1781 }
 0x20f   : > { %v4012_v22 = vpop.permute.xlu0 %1787 }
 0x212   : > { %v4014_v63 = vpop.permute.xlu1 %1785 }
 0x213   : > { %v4016_v45 = vpop.permute.xlu0 %1791 }
 0x216   : > { %v4018_v46 = vpop.permute.xlu1 %1789 }
 0x217   : > { %v4020_v30 = vpop.permute.xlu0 %1795 }
 0x218   : > { %4291 = vst [vmem:[#allocation9_spill] sm:$0xff] %v4020_v30  ;;  %v1812_v30 = vsel %vm1392_vm4, %v1752_v32, %v1754_v28  ;;  %v1479_v28 = vmul.f32 0.34340647, %v3611_v44 }
 0x219   : > { %v1862_v9 = vadd.f32 %v1812_v30, %v1477_v58 }
 0x21a   : > { %v4022_v20 = vpop.permute.xlu1 %1793 }
 0x21b   : > { %v4024_v39 = vpop.permute.xlu0 %1799 }
 0x21c   : > { %4292 = vst [vmem:[#allocation10_spill] sm:$0xff] %v4024_v39 }
 0x21e   : > { %v4026_v12 = vpop.permute.xlu1 %1797 }
 0x21f   : > { %4293 = vst [vmem:[#allocation11_spill] sm:$0xff] %v4026_v12  ;;  %v4028_v27 = vpop.permute.xlu0 %1803 }
 0x220   : > { %4294 = vst [vmem:[#allocation12_spill] sm:$0xff] %v4028_v27 }
 0x222   : > { %v4030_v14 = vpop.permute.xlu1 %1801 }
 0x223   : > { %4295 = vst [vmem:[#allocation13_spill] sm:$0xff] %v4030_v14  ;;  %v2101_v33 = vpop.permute.xlu0 %2100  ;;  %v1478_v14 = vmul.f32 0.34340647, %v3606_v24  ;;  %v1813_v24 = vsel %vm1392_vm4, %v3976_v17, %v1758_v48 }
 0x224   : > { %v2213_v39 = vadd.f32 %v2101_v33, %v1859_v31  ;;  %v1480_v31 = vmul.f32 0.34340647, %v3617_v4  ;;  %v1864_v4 = vadd.f32 %v1813_v24, %v1479_v28 }
 0x225   : > { %v1863_v10 = vadd.f32 %v3976_v17, %v1478_v14  ;;  %v1814_v17 = vsel %vm1392_vm4, %v3982_v61, %v3990_v43 }
 0x226   : > { %v4033_v16 = vpop.permute.xlu1 %1805  ;;  %v2596_v12 = vtrunc.f32 %v2213_v39  ;;  %v1865_v30 = vadd.f32 %v3982_v61, %v1480_v31 }
 0x227   : > { %4296 = vst [vmem:[#allocation14_spill] sm:$0xff] %v4033_v16  ;;  %v2105_v11 = vpop.permute.xlu0 %2104 }
 0x228   : > { %v2215_v3 = vadd.f32 %v2105_v11, %v1861_v34 }
 0x22a   : > { %v2103_v27 = vpop.permute.xlu1 %2102  ;;  %v2600_v23 = vtrunc.f32 %v2215_v3 }
 0x22b   : > { %v2165_v6 = vsel %vm2164_vm9, %v2101_v33, %v2103_v27  ;;  %v2109_v16 = vpop.permute.xlu0 %2108  ;;  %v2597_v27 = vcvt.f32.s32 %v2596_v12 }
 0x22c   : > { %v2214_v29 = vadd.f32 %v2165_v6, %v1860_v47  ;;  %v2217_v32 = vadd.f32 %v2109_v16, %v1863_v10  ;;  %v1481_v47 = vmul.f32 0.34340647, %v3622_v55  ;;  %v2601_v48 = vcvt.f32.s32 %v2600_v23 }
 0x22e   : > { %v2598_v21 = vtrunc.f32 %v2214_v29  ;;  %v2107_v2 = vpop.permute.xlu1 %2106  ;;  %v1866_v55 = vadd.f32 %v1814_v17, %v1481_v47  ;;  %v1483_v47 = vmul.f32 0.34340647, %v3633_v26 }
 0x22f   : > { %v2166_v34 = vsel %vm2164_vm9, %v2105_v11, %v2107_v2  ;;  %v2113_v14 = vpop.permute.xlu0 %2112  ;;  %v2604_v11 = vtrunc.f32 %v2217_v32 }
 0x230   : > { %v2599_v36 = vcvt.f32.s32 %v2598_v21  ;;  %v2216_v39 = vadd.f32 %v2166_v34, %v1862_v9  ;;  %v2219_v29 = vadd.f32 %v2113_v14, %v1865_v30 }
 0x231   : > { %v2605_v2 = vcvt.f32.s32 %v2604_v11  ;;  %v1484_v11 = vmul.f32 0.34340647, %v3639_v38 }
 0x232   : > { %v2277_v33 = vpack.c.b16 %v2599_v36, %v2597_v27  ;;  %v2602_v6 = vtrunc.f32 %v2216_v39  ;;  %v2111_v58 = vpop.permute.xlu1 %2110  ;;  %v2608_v28 = vtrunc.f32 %v2219_v29  ;;  %v1482_v36 = vmul.f32 0.34340647, %v3628_v54 }
 0x233   : > { %v2167_v44 = vsel %vm2164_vm9, %v2109_v16, %v2111_v58  ;;  %v1815_v39 = vsel %vm1392_vm4, %v3986_v57, %v3994_v50  ;;  %v1816_v54 = vsel %vm1392_vm4, %v3992_v56, %v3998_v7  ;;  %v1817_v7 = vsel %vm1392_vm4, %v3996_v18, %v4002_v8 }
 0x234   : > { %v2278_v12 = vpack.c.b8 %v2277_v33, %v2277_v33  ;;  %v2603_v3 = vcvt.f32.s32 %v2602_v6  ;;  %v2218_v10 = vadd.f32 %v2167_v44, %v1864_v4  ;;  %v1867_v33 = vadd.f32 %v3986_v57, %v1482_v36 }
 0x235   : > { %v1868_v6 = vadd.f32 %v1815_v39, %v1483_v47  ;;  %v1485_v44 = vmul.f32 0.34340647, %v3644_v25  ;;  %v1869_v57 = vadd.f32 %v3992_v56, %v1484_v11  ;;  %v1818_v8 = vsel %vm1392_vm4, %v4000_v13, %v4006_v52 }
 0x236   : > { %v2279_v9 = vpack.c.b16 %v2603_v3, %v2601_v48  ;;  %v2606_v21 = vtrunc.f32 %v2218_v10  ;;  %v2115_v31 = vpop.permute.xlu1 %2114  ;;  %2309 = vrot.lane.b32.xlu0 %v2278_v12, %s2682_s9  ;;  %v1486_v10 = vmul.f32 0.34340647, %v3650_v0 }
 0x237   : > { %v2168_v24 = vsel %vm2164_vm9, %v2113_v14, %v2115_v31  ;;  %v2609_v14 = vcvt.f32.s32 %v2608_v28 }
 0x238   : > { %v2280_v34 = vpack.c.b8 %v2279_v9, %v2279_v9  ;;  %v2607_v61 = vcvt.f32.s32 %v2606_v21  ;;  %v2220_v43 = vadd.f32 %v2168_v24, %v1866_v55  ;;  %v1870_v55 = vadd.f32 %v1816_v54, %v1485_v44 }
 0x239   : > { %v1487_v24 = vmul.f32 0.34340647, %v3655_v51  ;;  %v1871_v0 = vadd.f32 %v3996_v18, %v1486_v10  ;;  %v1492_v10 = vmul.f32 0.34340647, %v3684_v59 }
 0x23a   : > { %v2281_v23 = vpack.c.b16 %v2607_v61, %v2605_v2  ;;  %v2610_v32 = vtrunc.f32 %v2220_v43  ;;  %v4056_v16 = vpop.permute.xlu1 %1809  ;;  %2311 = vrot.lane.b32.xlu1 %v2280_v34, %s2682_s9  ;;  %v4059_v27 = vpop.permute.xlu0 %1807  ;;  %v1488_v61 = vmul.f32 0.34340647, %v3662_v35 }
 0x23b   : > { %v1872_v43 = vadd.f32 %v1817_v7, %v1487_v24  ;;  %v1820_v7 = vsel %vm1392_vm4, %v4008_v15, %v4014_v63 }
 0x23c   : > { %v2282_v30 = vpack.c.b8 %v2281_v23, %v2281_v23  ;;  %v2611_v4 = vcvt.f32.s32 %v2610_v32  ;;  %v1873_v35 = vadd.f32 %v4000_v13, %v1488_v61  ;;  %v1491_v13 = vmul.f32 0.34340647, %v3679_v42 }
 0x23e   : > { %v2283_v58 = vpack.c.b16 %v2611_v4, %v2609_v14  ;;  %v2119_v17 = vpop.permute.xlu1 %2118  ;;  %2313 = vrot.lane.b32.xlu0 %v2282_v30, %s2682_s9  ;;  %v2117_v48 = vpop.permute.xlu0 %2116  ;;  %v1489_v30 = vmul.f32 0.34340647, %v3668_v1 }
 0x23f   : > { %v2169_v50 = vsel %vm2164_vm9, %v2117_v48, %v2119_v17  ;;  %v2221_v26 = vadd.f32 %v2117_v48, %v1867_v33 }
 0x240   : > { %v2284_v12 = vpack.c.b8 %v2283_v58, %v2283_v58  ;;  %v2222_v3 = vadd.f32 %v2169_v50, %v1868_v6  ;;  %v1490_v58 = vmul.f32 0.34340647, %v3673_v5  ;;  %v1874_v17 = vadd.f32 %v1818_v8, %v1489_v30 }
 0x241   : > { %v2612_v29 = vtrunc.f32 %v2221_v26  ;;  %v1819_v50 = vsel %vm1392_vm4, %v4004_v37, %v4010_v60  ;;  %v1496_v30 = vmul.f32 0.34340647, %v3706_v49 }
 0x242   : > { %v2614_v9 = vtrunc.f32 %v2222_v3  ;;  %v2123_v21 = vpop.permute.xlu1 %2122  ;;  %2315 = vrot.lane.b32.xlu1 %v2284_v12, %s2682_s9  ;;  %v2121_v38 = vpop.permute.xlu0 %2120 }
 0x243   : > { %v2613_v31 = vcvt.f32.s32 %v2612_v29  ;;  %v2170_v25 = vsel %vm2164_vm9, %v2121_v38, %v2123_v21  ;;  %v2223_v2 = vadd.f32 %v2121_v38, %v1869_v57  ;;  %v1875_v57 = vadd.f32 %v4004_v37, %v1490_v58 }
 0x244   : > { %v2615_v56 = vcvt.f32.s32 %v2614_v9  ;;  %v2224_v34 = vadd.f32 %v2170_v25, %v1870_v55  ;;  %v1876_v55 = vadd.f32 %v1819_v50, %v1491_v13  ;;  %v1493_v37 = vmul.f32 0.34340647, %v3690_v62 }
 0x245   : > { %v2616_v28 = vtrunc.f32 %v2223_v2  ;;  %v1498_v50 = vmul.f32 0.34340647, %v3717_v41 }
 0x246   : > { %v2285_v23 = vpack.c.b16 %v2615_v56, %v2613_v31  ;;  %v2618_v32 = vtrunc.f32 %v2224_v34  ;;  %v2127_v36 = vpop.permute.xlu1 %2126  ;;  %v2125_v39 = vpop.permute.xlu0 %2124  ;;  %v1877_v56 = vadd.f32 %v4008_v15, %v1492_v10  ;;  %v1495_v15 = vmul.f32 0.34340647, %v3701_v40  ;;  %v4299_v10 = vld [vmem:[#allocation2_spill] sm:$0xff] }
 0x247   : > { %v2617_v47 = vcvt.f32.s32 %v2616_v28  ;;  %v2171_v14 = vsel %vm2164_vm9, %v2125_v39, %v2127_v36  ;;  %v2225_v51 = vadd.f32 %v2125_v39, %v1871_v0  ;;  %v1494_v0 = vmul.f32 0.34340647, %v3695_v53 }
 0x248   : > { %v2286_v4 = vpack.c.b8 %v2285_v23, %v2285_v23  ;;  %v2619_v18 = vcvt.f32.s32 %v2618_v32  ;;  %v2226_v33 = vadd.f32 %v2171_v14, %v1872_v43  ;;  %v1878_v28 = vadd.f32 %v1820_v7, %v1493_v37 }
 0x249   : > { %v2620_v6 = vtrunc.f32 %v2225_v51  ;;  %v1821_v32 = vsel %vm1392_vm4, %v4012_v22, %v4018_v46  ;;  %v1879_v14 = vadd.f32 %v4012_v22, %v1494_v0  ;;  %v1497_v22 = vmul.f32 0.34340647, %v3712_v19 }
 0x24a   : > { %v2287_v48 = vpack.c.b16 %v2619_v18, %v2617_v47  ;;  %v2622_v11 = vtrunc.f32 %v2226_v33  ;;  %v2131_v54 = vpop.permute.xlu1 %2130  ;;  %2317 = vrot.lane.b32.xlu0 %v2286_v4, %s2682_s9  ;;  %v2129_v52 = vpop.permute.xlu0 %2128  ;;  %v1880_v4 = vadd.f32 %v1821_v32, %v1495_v15 }
 0x24b   : > { %v2621_v1 = vcvt.f32.s32 %v2620_v6  ;;  %v2172_v26 = vsel %vm2164_vm9, %v2129_v52, %v2131_v54  ;;  %v2227_v44 = vadd.f32 %v2129_v52, %v1873_v35  ;;  %v1822_v6 = vsel %vm1392_vm4, %v4016_v45, %v4022_v20 }
 0x24c   : > { %v2288_v12 = vpack.c.b8 %v2287_v48, %v2287_v48  ;;  %v2623_v3 = vcvt.f32.s32 %v2622_v11  ;;  %v2228_v5 = vadd.f32 %v2172_v26, %v1874_v17  ;;  %v1881_v54 = vadd.f32 %v4016_v45, %v1496_v30  ;;  %v4305_v30 = vld [vmem:[#allocation14_spill] sm:$0xff] }
 0x24d   : > { %v2624_v29 = vtrunc.f32 %v2227_v44  ;;  %v1499_v45 = vmul.f32 0.34340647, %v4299_v10 }
 0x24e   : > { %v2289_v9 = vpack.c.b16 %v2623_v3, %v2621_v1  ;;  %v2626_v21 = vtrunc.f32 %v2228_v5  ;;  %v2135_v38 = vpop.permute.xlu1 %2134  ;;  %2319 = vrot.lane.b32.xlu1 %v2288_v12, %s2682_s9  ;;  %v2133_v60 = vpop.permute.xlu0 %2132  ;;  %v1882_v1 = vadd.f32 %v1822_v6, %v1497_v22  ;;  %v4297_v12 = vld [vmem:[#allocation11_spill] sm:$0xff]  ;;  %v4298_v3 = vld [vmem:[#allocation9_spill] sm:$0xff]  ;;  %v4307_v6 = vld [vmem:[#allocation6_spill] sm:$0xff] }
 0x24f   : > { %v2625_v42 = vcvt.f32.s32 %v2624_v29  ;;  %v2173_v31 = vsel %vm2164_vm9, %v2133_v60, %v2135_v38  ;;  %v2229_v25 = vadd.f32 %v2133_v60, %v1875_v57  ;;  %v1823_v5 = vsel %vm1392_vm4, %v4298_v3, %v4297_v12  ;;  %v4300_v60 = vld [vmem:[#allocation3_spill] sm:$0xff] }
 0x250   : > { %v2290_v2 = vpack.c.b8 %v2289_v9, %v2289_v9  ;;  %v2627_v24 = vcvt.f32.s32 %v2626_v21  ;;  %v2230_v59 = vadd.f32 %v2173_v31, %v1876_v55  ;;  %v1883_v21 = vadd.f32 %v4298_v3, %v1498_v50 }
 0x251   : > { %v2628_v34 = vtrunc.f32 %v2229_v25  ;;  %v1500_v7 = vmul.f32 0.34340647, %v4300_v60 }
 0x252   : > { %v2291_v61 = vpack.c.b16 %v2627_v24, %v2625_v42  ;;  %v2630_v43 = vtrunc.f32 %v2230_v59  ;;  %v2139_v23 = vpop.permute.xlu1 %2138  ;;  %2321 = vrot.lane.b32.xlu0 %v2290_v2, %s2682_s9  ;;  %v2137_v63 = vpop.permute.xlu0 %2136  ;;  %v1884_v42 = vadd.f32 %v1823_v5, %v1499_v45  ;;  %v4301_v24 = vld [vmem:[#allocation13_spill] sm:$0xff]  ;;  %v4302_v59 = vld [vmem:[#allocation10_spill] sm:$0xff]  ;;  %v4309_v5 = vld [vmem:[#allocation8_spill] sm:$0xff] }
 0x253   : > { %v2629_v62 = vcvt.f32.s32 %v2628_v34  ;;  %v2174_v36 = vsel %vm2164_vm9, %v2137_v63, %v2139_v23  ;;  %v2231_v39 = vadd.f32 %v2137_v63, %v1877_v56  ;;  %v1824_v56 = vsel %vm1392_vm4, %v4302_v59, %v4301_v24 }
 0x254   : > { %v2292_v8 = vpack.c.b8 %v2291_v61, %v2291_v61  ;;  %v2631_v47 = vcvt.f32.s32 %v2630_v43  ;;  %v2232_v53 = vadd.f32 %v2174_v36, %v1878_v28  ;;  %v4303_v61 = vld [vmem:[#allocation4_spill] sm:$0xff] }
 0x255   : > { %v2632_v51 = vtrunc.f32 %v2231_v39  ;;  %v1501_v43 = vmul.f32 0.34340647, %v4303_v61  ;;  %v4304_v39 = vld [vmem:[#allocation5_spill] sm:$0xff] }
 0x256   : > { %v2293_v18 = vpack.c.b16 %v2631_v47, %v2629_v62  ;;  %v2634_v33 = vtrunc.f32 %v2232_v53  ;;  %v2143_v35 = vpop.permute.xlu1 %2142  ;;  %2323 = vrot.lane.b32.xlu1 %v2292_v8, %s2682_s9  ;;  %v2141_v46 = vpop.permute.xlu0 %2140  ;;  %v1885_v62 = vadd.f32 %v4302_v59, %v1500_v7  ;;  %v1502_v15 = vmul.f32 0.34340647, %v4304_v39 }
 0x257   : > { %v2633_v40 = vcvt.f32.s32 %v2632_v51  ;;  %v2175_v58 = vsel %vm2164_vm9, %v2141_v46, %v2143_v35  ;;  %v2233_v17 = vadd.f32 %v2141_v46, %v1879_v14  ;;  %v1886_v8 = vadd.f32 %v1824_v56, %v1501_v43 }
 0x258   : > { %v2294_v48 = vpack.c.b8 %v2293_v18, %v2293_v18  ;;  %v2635_v11 = vcvt.f32.s32 %v2634_v33  ;;  %v2234_v49 = vadd.f32 %v2175_v58, %v1880_v4  ;;  %v4306_v4 = vld [vmem:[#allocation12_spill] sm:$0xff] }
 0x259   : > { %v2636_v52 = vtrunc.f32 %v2233_v17  ;;  %v1825_v18 = vsel %vm1392_vm4, %v4306_v4, %v4305_v30 }
 0x25a   : > { %v2295_v26 = vpack.c.b16 %v2635_v11, %v2633_v40  ;;  %v2638_v44 = vtrunc.f32 %v2234_v49  ;;  %v2147_v13 = vpop.permute.xlu1 %2146  ;;  %2325 = vrot.lane.b32.xlu0 %v2294_v48, %s2682_s9  ;;  %v2145_v20 = vpop.permute.xlu0 %2144  ;;  %v1503_v40 = vmul.f32 0.34340647, %v4307_v6  ;;  %v1887_v48 = vadd.f32 %v4306_v4, %v1502_v15 }
 0x25b   : > { %v2637_v19 = vcvt.f32.s32 %v2636_v52  ;;  %v2176_v57 = vsel %vm2164_vm9, %v2145_v20, %v2147_v13  ;;  %v2235_v29 = vadd.f32 %v2145_v20, %v1881_v54  ;;  %v4308_v54 = vld [vmem:[#allocation7_spill] sm:$0xff]  ;;  %v1826_v13 = vsel %vm1392_vm4, %v4059_v27, %v4056_v16 }
 0x25c   : > { %v2296_v55 = vpack.c.b8 %v2295_v26, %v2295_v26  ;;  %v2639_v9 = vcvt.f32.s32 %v2638_v44  ;;  %v2236_v41 = vadd.f32 %v2176_v57, %v1882_v1  ;;  %v1888_v49 = vadd.f32 %v1825_v18, %v1503_v40 }
 0x25d   : > { %v2640_v38 = vtrunc.f32 %v2235_v29  ;;  %v1504_v52 = vmul.f32 0.34340647, %v4308_v54 }
 0x25e   : > { %v2297_v31 = vpack.c.b16 %v2639_v9, %v2637_v19  ;;  %v2642_v25 = vtrunc.f32 %v2236_v41  ;;  %v2151_v37 = vpop.permute.xlu1 %2150  ;;  %2327 = vrot.lane.b32.xlu1 %v2296_v55, %s2682_s9  ;;  %v2149_v2 = vpop.permute.xlu0 %2148  ;;  %v1505_v19 = vmul.f32 0.34340647, %v4309_v5 }
 0x25f   : > { %v2641_v34 = vcvt.f32.s32 %v2640_v38  ;;  %v2177_v0 = vsel %vm2164_vm9, %v2149_v2, %v2151_v37  ;;  %v2237_v28 = vadd.f32 %v2149_v2, %v1883_v21  ;;  %v1889_v45 = vadd.f32 %v4059_v27, %v1504_v52 }
 0x260   : > { %v2298_v23 = vpack.c.b8 %v2297_v31, %v2297_v31  ;;  %v2643_v63 = vcvt.f32.s32 %v2642_v25  ;;  %v2238_v32 = vadd.f32 %v2177_v0, %v1884_v42  ;;  %v1890_v9 = vadd.f32 %v1826_v13, %v1505_v19 }
 0x261   : > { %v2644_v36 = vtrunc.f32 %v2237_v28 }
 0x262   : > { %v2299_v47 = vpack.c.b16 %v2643_v63, %v2641_v34  ;;  %v2646_v53 = vtrunc.f32 %v2238_v32  ;;  %v2155_v14 = vpop.permute.xlu1 %2154  ;;  %2329 = vrot.lane.b32.xlu0 %v2298_v23, %s2682_s9  ;;  %v2153_v51 = vpop.permute.xlu0 %2152 }
 0x263   : > { %v2645_v33 = vcvt.f32.s32 %v2644_v36  ;;  %v2178_v35 = vsel %vm2164_vm9, %v2153_v51, %v2155_v14  ;;  %v2239_v46 = vadd.f32 %v2153_v51, %v1885_v62 }
 0x264   : > { %v2300_v58 = vpack.c.b8 %v2299_v47, %v2299_v47  ;;  %v2647_v17 = vcvt.f32.s32 %v2646_v53  ;;  %v2240_v22 = vadd.f32 %v2178_v35, %v1886_v8 }
 0x265   : > { %v2648_v11 = vtrunc.f32 %v2239_v46 }
 0x266   : > { %v2301_v50 = vpack.c.b16 %v2647_v17, %v2645_v33  ;;  %v2650_v1 = vtrunc.f32 %v2240_v22  ;;  %v2159_v26 = vpop.permute.xlu1 %2158  ;;  %2331 = vrot.lane.b32.xlu1 %v2300_v58, %s2682_s9  ;;  %v2157_v44 = vpop.permute.xlu0 %2156 }
 0x267   : > { %v2649_v20 = vcvt.f32.s32 %v2648_v11  ;;  %v2179_v12 = vsel %vm2164_vm9, %v2157_v44, %v2159_v26  ;;  %v2241_v3 = vadd.f32 %v2157_v44, %v1887_v48 }
 0x268   : > { %v2302_v57 = vpack.c.b8 %v2301_v50, %v2301_v50  ;;  %v2651_v29 = vcvt.f32.s32 %v2650_v1  ;;  %v2242_v10 = vadd.f32 %v2179_v12, %v1888_v49 }
 0x269   : > { %v2652_v55 = vtrunc.f32 %v2241_v3 }
 0x26a   : > { %v2303_v41 = vpack.c.b16 %v2651_v29, %v2649_v20  ;;  %v2654_v21 = vtrunc.f32 %v2242_v10  ;;  %v2163_v38 = vpop.permute.xlu1 %2162  ;;  %2333 = vrot.lane.b32.xlu0 %v2302_v57, %s2682_s9  ;;  %v2161_v60 = vpop.permute.xlu0 %2160 }
 0x26b   : > { %v2653_v16 = vcvt.f32.s32 %v2652_v55  ;;  %v2180_v7 = vsel %vm2164_vm9, %v2161_v60, %v2163_v38  ;;  %v2243_v42 = vadd.f32 %v2161_v60, %v1889_v45 }
 0x26c   : > { %v2304_v31 = vpack.c.b8 %v2303_v41, %v2303_v41  ;;  %v2655_v25 = vcvt.f32.s32 %v2654_v21  ;;  %v2244_v37 = vadd.f32 %v2180_v7, %v1890_v9 }
 0x26d   : > { %v2656_v2 = vtrunc.f32 %v2243_v42 }
 0x26e   : > { %v2305_v24 = vpack.c.b16 %v2655_v25, %v2653_v16  ;;  %v2658_v59 = vtrunc.f32 %v2244_v37  ;;  %2335 = vrot.lane.b32.xlu1 %v2304_v31, %s2682_s9 }
 0x26f   : > { %v2657_v27 = vcvt.f32.s32 %v2656_v2 }
 0x270   : > { %v2306_v56 = vpack.c.b8 %v2305_v24, %v2305_v24  ;;  %v2659_v34 = vcvt.f32.s32 %v2658_v59 }
 0x272   : > { %v2307_v0 = vpack.c.b16 %v2659_v34, %v2657_v27  ;;  %2337 = vrot.lane.b32.xlu0 %v2306_v56, %s2682_s9 }
 0x274   : > { %v2308_v28 = vpack.c.b8 %v2307_v0, %v2307_v0 }
 0x276   : > { %2339 = vrot.lane.b32.xlu1 %v2308_v28, %s2682_s9 }
 0x2a8   : > { %v2310_v61 = vpop.permute.xlu0 %2309 }
 0x2a9   : > { %v2341_v23 = vrot.slane %v2310_v61, 2 }
 0x2ab   : > { %v2358_v63 = vsel %vm1955_vm8, %v2310_v61, %v2341_v23 }
 0x2ac   : > { %2376 = vst.msk [vmem:[%s4163_s17] sm:$0xf] %vm4166_vm11, %v2358_v63  ;;  %v2312_v32 = vpop.permute.xlu1 %2311 }
 0x2ad   : > { %v2342_v62 = vrot.slane %v2312_v32, 2 }
 0x2af   : > { %v2359_v36 = vsel %vm1955_vm8, %v2312_v32, %v2342_v62 }
 0x2b0   : > { %2377 = vst.msk [vmem:[%s4163_s17 + $0x4] sm:$0xf] %vm4166_vm11, %v2359_v36  ;;  %v2314_v39 = vpop.permute.xlu0 %2313 }
 0x2b1   : > { %v2343_v15 = vrot.slane %v2314_v39, 2 }
 0x2b3   : > { %v2360_v8 = vsel %vm1955_vm8, %v2314_v39, %v2343_v15 }
 0x2b4   : > { %2378 = vst.msk [vmem:[%s4163_s17 + $0x8] sm:$0xf] %vm4166_vm11, %v2360_v8  ;;  %v2316_v47 = vpop.permute.xlu1 %2315 }
 0x2b5   : > { %v2344_v53 = vrot.slane %v2316_v47, 2 }
 0x2b7   : > { %v2361_v14 = vsel %vm1955_vm8, %v2316_v47, %v2344_v53 }
 0x2b8   : > { %2379 = vst.msk [vmem:[%s4163_s17 + $0xc] sm:$0xf] %vm4166_vm11, %v2361_v14 }
 0x2bc   : > { %v2318_v51 = vpop.permute.xlu0 %2317 }
 0x2bd   : > { %v2345_v30 = vrot.slane %v2318_v51, 2 }
 0x2bf   : > { %v2362_v4 = vsel %vm1955_vm8, %v2318_v51, %v2345_v30 }
 0x2c0   : > { %2380 = vst.msk [vmem:[%s4163_s17 + $0x10] sm:$0xf] %vm4166_vm11, %v2362_v4  ;;  %v2320_v18 = vpop.permute.xlu1 %2319 }
 0x2c1   : > { %v2346_v33 = vrot.slane %v2320_v18, 2 }
 0x2c3   : > { %v2363_v35 = vsel %vm1955_vm8, %v2320_v18, %v2346_v33 }
 0x2c4   : > { %2381 = vst.msk [vmem:[%s4163_s17 + $0x14] sm:$0xf] %vm4166_vm11, %v2363_v35  ;;  %v2322_v46 = vpop.permute.xlu0 %2321 }
 0x2c5   : > { %v2347_v6 = vrot.slane %v2322_v46, 2 }
 0x2c7   : > { %v2364_v40 = vsel %vm1955_vm8, %v2322_v46, %v2347_v6 }
 0x2c8   : > { %2382 = vst.msk [vmem:[%s4163_s17 + $0x18] sm:$0xf] %vm4166_vm11, %v2364_v40  ;;  %v2324_v58 = vpop.permute.xlu1 %2323 }
 0x2c9   : > { %v2348_v17 = vrot.slane %v2324_v58, 2 }
 0x2cb   : > { %v2365_v22 = vsel %vm1955_vm8, %v2324_v58, %v2348_v17 }
 0x2cc   : > { %2383 = vst.msk [vmem:[%s4163_s17 + $0x1c] sm:$0xf] %vm4166_vm11, %v2365_v22  ;;  %v2326_v48 = vpop.permute.xlu0 %2325 }
 0x2cd   : > { %v2349_v11 = vrot.slane %v2326_v48, 2 }
 0x2cf   : > { %v2366_v49 = vsel %vm1955_vm8, %v2326_v48, %v2349_v11 }
 0x2d0   : > { %2384 = vst.msk [vmem:[%s4163_s17 + $0x20] sm:$0xf] %vm4166_vm11, %v2366_v49  ;;  %v2328_v54 = vpop.permute.xlu1 %2327 }
 0x2d1   : > { %v2350_v52 = vrot.slane %v2328_v54, 2 }
 0x2d3   : > { %v2367_v50 = vsel %vm1955_vm8, %v2328_v54, %v2350_v52 }
 0x2d4   : > { %2385 = vst.msk [vmem:[%s4163_s17 + $0x24] sm:$0xf] %vm4166_vm11, %v2367_v50  ;;  %v2330_v1 = vpop.permute.xlu0 %2329 }
 0x2d5   : > { %v2351_v26 = vrot.slane %v2330_v1, 2 }
 0x2d7   : > { %v2368_v44 = vsel %vm1955_vm8, %v2330_v1, %v2351_v26 }
 0x2d8   : > { %2386 = vst.msk [vmem:[%s4163_s17 + $0x28] sm:$0xf] %vm4166_vm11, %v2368_v44  ;;  %v2332_v13 = vpop.permute.xlu1 %2331 }
 0x2d9   : > { %v2352_v20 = vrot.slane %v2332_v13, 2 }
 0x2db   : > { %v2369_v12 = vsel %vm1955_vm8, %v2332_v13, %v2352_v20 }
 0x2dc   : > { %2387 = vst.msk [vmem:[%s4163_s17 + $0x2c] sm:$0xf] %vm4166_vm11, %v2369_v12  ;;  %v2334_v3 = vpop.permute.xlu0 %2333 }
 0x2dd   : > { %v2353_v5 = vrot.slane %v2334_v3, 2 }
 0x2df   : > { %v2370_v19 = vsel %vm1955_vm8, %v2334_v3, %v2353_v5 }
 0x2e0   : > { %2388 = vst.msk [vmem:[%s4163_s17 + $0x30] sm:$0xf] %vm4166_vm11, %v2370_v19  ;;  %v2336_v57 = vpop.permute.xlu1 %2335 }
 0x2e1   : > { %v2354_v29 = vrot.slane %v2336_v57, 2 }
 0x2e3   : > { %v2371_v10 = vsel %vm1955_vm8, %v2336_v57, %v2354_v29 }
 0x2e4   : > { %2389 = vst.msk [vmem:[%s4163_s17 + $0x34] sm:$0xf] %vm4166_vm11, %v2371_v10  ;;  %v2338_v45 = vpop.permute.xlu0 %2337 }
 0x2e5   : > { %v2355_v55 = vrot.slane %v2338_v45, 2 }
 0x2e7   : > { %v2372_v9 = vsel %vm1955_vm8, %v2338_v45, %v2355_v55 }
 0x2e8   : > { %2390 = vst.msk [vmem:[%s4163_s17 + $0x38] sm:$0xf] %vm4166_vm11, %v2372_v9  ;;  %v2340_v41 = vpop.permute.xlu1 %2339 }
 0x2e9   : > { %v2356_v21 = vrot.slane %v2340_v41, 2 }
 0x2eb   : > { %v2373_v38 = vsel %vm1955_vm8, %v2340_v41, %v2356_v21 }
 0x2ec   : > { %2391 = vst.msk [vmem:[%s4163_s17 + $0x3c] sm:$0xf] %vm4166_vm11, %v2373_v38 }
 0x2ed PF: > { %s13_s12 = sadd.s32 1, %s2678_s12  }
 0x2ee   : > { %p10_p8 = scmp.ge.s32.totalorder %s13_s12, 6  }
 0x2f0   :  { %12 = sbr.rel (!%p10_p8) target bundleno = 1 (0x1), region = 68 }

</bundles_post_ra>
